<compile_context>
chip_gen: v7x
topology: tpu7x:2x2x1
jax: 0.10.0
libtpu: 0.0.40
codegen_flags: <defaults>
</compile_context>

<pallas_src>
import functools

import jax
import jax.numpy as jnp
import numpy as np
from jax.experimental import pallas as pl
from jax.experimental.pallas import tpu as pltpu


# ----------------------------------------------------------------------------
# Fused kernel: 3x3 conv (as 9 shifted flat matmuls) + bias + ReLU + global
# average pool + projector MLP, one batch element per grid step.
# ----------------------------------------------------------------------------
def _simclr_kernel(x_ref, cw_ref, cb_ref, w1_ref, b1_ref, w2_ref, b2_ref,
                   z_ref, *, H, W, C, inv_hw):
    HW = H * W
    cw = cw_ref[...]                                   # (9, C, HID), tap-major [dy, dx]
    hid = cw.shape[-1]

    # --- backbone: conv3x3 as sum over 9 taps of (HW, C) @ (C, HID) ---------
    acc = jnp.zeros((HW, hid), jnp.float32)
    for t, (dy, dx) in enumerate((dy, dx) for dy in range(3) for dx in range(3)):
        xs = x_ref[0, dy:dy + H, dx:dx + W, :]         # (H, W, C) shifted window
        xs = xs.reshape(HW, C)                         # flatten spatial into MXU M dim
        acc = acc + jnp.dot(xs, cw[t], preferred_element_type=jnp.float32)

    feat = jnp.maximum(acc + cb_ref[...], 0.0)         # bias + ReLU   (HW, HID)
    r = jnp.sum(feat, axis=0, keepdims=True) * inv_hw  # global avg pool (1, HID)

    # --- projector: Linear -> ReLU -> Linear --------------------------------
    h = jnp.maximum(
        jnp.dot(r, w1_ref[...], preferred_element_type=jnp.float32) + b1_ref[...],
        0.0)
    z = jnp.dot(h, w2_ref[...], preferred_element_type=jnp.float32) + b2_ref[...]
    z_ref[...] = z[None]                               # (1, 1, PD)


# ----------------------------------------------------------------------------
# Wrapper: NCHW -> padded NHWC, single fused pallas_call over the batch axis.
# ----------------------------------------------------------------------------
@jax.jit
def simclr_forward(x_nchw, params):
    conv_w, conv_b, w1, b1, w2, b2 = params
    n, c, h, w = x_nchw.shape
    hid = conv_w.shape[1]
    ph = w1.shape[1]
    pd = w2.shape[1]

    x_nhwc = jnp.transpose(x_nchw, (0, 2, 3, 1)).astype(jnp.float32)
    x_pad = jnp.pad(x_nhwc, ((0, 0), (1, 1), (1, 1), (0, 0)))   # (N, H+2, W+2, C)
    cw9 = conv_w.reshape(9, c, hid)                             # [dy, dx] x (C, HID)

    kernel = functools.partial(
        _simclr_kernel, H=h, W=w, C=c, inv_hw=1.0 / float(h * w))

    z3 = pl.pallas_call(
        kernel,
        out_shape=jax.ShapeDtypeStruct((n, 1, pd), jnp.float32),
        grid=(n,),
        in_specs=[
            pl.BlockSpec((1, h + 2, w + 2, c), lambda b: (b, 0, 0, 0)),
            pl.BlockSpec((9, c, hid), lambda b: (0, 0, 0)),
            pl.BlockSpec((1, hid), lambda b: (0, 0)),
            pl.BlockSpec((hid, ph), lambda b: (0, 0)),
            pl.BlockSpec((1, ph), lambda b: (0, 0)),
            pl.BlockSpec((ph, pd), lambda b: (0, 0)),
            pl.BlockSpec((1, pd), lambda b: (0, 0)),
        ],
        out_specs=pl.BlockSpec((1, 1, pd), lambda b: (b, 0, 0)),
        compiler_params=pltpu.CompilerParams(
            dimension_semantics=("parallel",)),
    )(x_pad, cw9, conv_b, w1, b1, w2, b2)
    return z3[:, 0, :]                                          # (N, PD)


def init_params(key, c=4, hid=32, ph=64, pd=32):
    ks = jax.random.split(key, 6)
    conv_w = 0.05 * jax.random.normal(ks[0], (9 * c, hid), jnp.float32)
    conv_b = 0.01 * jax.random.normal(ks[1], (1, hid), jnp.float32)
    w1 = 0.05 * jax.random.normal(ks[2], (hid, ph), jnp.float32)
    b1 = 0.01 * jax.random.normal(ks[3], (1, ph), jnp.float32)
    w2 = 0.05 * jax.random.normal(ks[4], (ph, pd), jnp.float32)
    b2 = 0.01 * jax.random.normal(ks[5], (1, pd), jnp.float32)
    return conv_w, conv_b, w1, b1, w2, b2


# ----------------------------------------------------------------------------
# Pure-JAX reference with identical semantics (validation only).
# ----------------------------------------------------------------------------
def _im2col_3x3(x_nhwc):
    n, h, w, c = x_nhwc.shape
    xp = jnp.pad(x_nhwc, ((0, 0), (1, 1), (1, 1), (0, 0)))
    cols = []
    for dy in range(3):
        for dx in range(3):
            cols.append(xp[:, dy:dy + h, dx:dx + w, :])
    return jnp.concatenate(cols, axis=-1).reshape(n, h * w, 9 * c)


def _reference_forward(x_nchw, params):
    conv_w, conv_b, w1, b1, w2, b2 = params
    x_nhwc = jnp.transpose(x_nchw, (0, 2, 3, 1)).astype(jnp.float32)
    patches = _im2col_3x3(x_nhwc)
    feat = jnp.maximum(jnp.einsum("nsc,ch->nsh", patches, conv_w) + conv_b, 0.0)
    r = jnp.mean(feat, axis=1)
    hdn = jnp.maximum(r @ w1 + b1, 0.0)
    return hdn @ w2 + b2


if __name__ == "__main__":
    key = jax.random.PRNGKey(0)
    k_x, k_p = jax.random.split(key)

    # small shapes: batch=2, channels=4, spatial=16x16
    x = jax.random.normal(k_x, (2, 4, 16, 16), jnp.float32)   # NCHW like PyTorch
    params = init_params(k_p, c=4, hid=32, ph=64, pd=32)

    z = simclr_forward(x, params)
    z = jax.block_until_ready(z)

    z_ref = jax.block_until_ready(_reference_forward(x, params))
    assert z.shape == (2, 32)
    np.testing.assert_allclose(np.asarray(z), np.asarray(z_ref),
                               rtol=1e-5, atol=1e-5)
    print("KERNEL_OK")
</pallas_src>

<mosaic_0001>
module attributes {stable_mosaic.version = 11 : i64} {
  func.func @_simclr_kernel(%arg0: i32, %arg1: memref<1x18x18x4xf32, #tpu.memory_space<vmem>>, %arg2: memref<9x4x32xf32, #tpu.memory_space<vmem>>, %arg3: memref<1x32xf32, #tpu.memory_space<vmem>>, %arg4: memref<32x64xf32, #tpu.memory_space<vmem>>, %arg5: memref<1x64xf32, #tpu.memory_space<vmem>>, %arg6: memref<64x32xf32, #tpu.memory_space<vmem>>, %arg7: memref<1x32xf32, #tpu.memory_space<vmem>>, %arg8: memref<1x1x32xf32, #tpu.memory_space<vmem>>) attributes {dimension_semantics = [#tpu.dimension_semantics<parallel>], iteration_bounds = array<i64: 2>, scalar_prefetch = 0 : i64, scratch_operands = 0 : i64, tpu.core_type = #tpu.core_type<tc>, window_params = [{transform_indices = @transform_0, window_bounds = array<i64: 1, 18, 18, 4>}, {pipeline_mode = #tpu.pipeline_mode<synchronous>, transform_indices = @transform_1, window_bounds = array<i64: 9, 4, 32>}, {pipeline_mode = #tpu.pipeline_mode<synchronous>, transform_indices = @transform_2, window_bounds = array<i64: 1, 32>}, {pipeline_mode = #tpu.pipeline_mode<synchronous>, transform_indices = @transform_3, window_bounds = array<i64: 32, 64>}, {pipeline_mode = #tpu.pipeline_mode<synchronous>, transform_indices = @transform_4, window_bounds = array<i64: 1, 64>}, {pipeline_mode = #tpu.pipeline_mode<synchronous>, transform_indices = @transform_5, window_bounds = array<i64: 64, 32>}, {pipeline_mode = #tpu.pipeline_mode<synchronous>, transform_indices = @transform_6, window_bounds = array<i64: 1, 32>}, {transform_indices = @transform_7, window_bounds = array<i64: 1, 1, 32>}]} {
    %c0 = arith.constant 0 : index
    %c0_0 = arith.constant 0 : index
    %c0_1 = arith.constant 0 : index
    %0 = vector.load %arg2[%c0, %c0_0, %c0_1] : memref<9x4x32xf32, #tpu.memory_space<vmem>>, vector<9x4x32xf32>
    %cst = arith.constant 0.000000e+00 : f32
    %1 = vector.broadcast %cst : f32 to vector<256x32xf32>
    %c0_2 = arith.constant 0 : index
    %c0_3 = arith.constant 0 : index
    %c0_4 = arith.constant 0 : index
    %c0_5 = arith.constant 0 : index
    %2 = vector.load %arg1[%c0_2, %c0_3, %c0_4, %c0_5] : memref<1x18x18x4xf32, #tpu.memory_space<vmem>>, vector<1x16x16x4xf32>
    %3 = vector.shape_cast %2 : vector<1x16x16x4xf32> to vector<16x16x4xf32>
    %4 = vector.shape_cast %3 : vector<16x16x4xf32> to vector<256x4xf32>
    %5 = vector.extract_strided_slice %0 {offsets = [0, 0, 0], sizes = [1, 4, 32], strides = [1, 1, 1]} : vector<9x4x32xf32> to vector<1x4x32xf32>
    %6 = vector.shape_cast %5 : vector<1x4x32xf32> to vector<4x32xf32>
    %cst_6 = arith.constant dense<0.000000e+00> : vector<256x32xf32>
    %7 = tpu.matmul %4, %6, %cst_6 {dimension_numbers = #tpu.dot_dimension_numbers<[1], [0], [0], [1], [0, 0, 1, 1], [], []>} : vector<256x4xf32>, vector<4x32xf32>, vector<256x32xf32> -> vector<256x32xf32>
    %8 = arith.addf %1, %7 : vector<256x32xf32>
    %c0_7 = arith.constant 0 : index
    %c0_8 = arith.constant 0 : index
    %c1 = arith.constant 1 : index
    %c0_9 = arith.constant 0 : index
    %9 = vector.load %arg1[%c0_7, %c0_8, %c1, %c0_9] : memref<1x18x18x4xf32, #tpu.memory_space<vmem>>, vector<1x16x16x4xf32>
    %10 = vector.shape_cast %9 : vector<1x16x16x4xf32> to vector<16x16x4xf32>
    %11 = vector.shape_cast %10 : vector<16x16x4xf32> to vector<256x4xf32>
    %12 = vector.extract_strided_slice %0 {offsets = [1, 0, 0], sizes = [1, 4, 32], strides = [1, 1, 1]} : vector<9x4x32xf32> to vector<1x4x32xf32>
    %13 = vector.shape_cast %12 : vector<1x4x32xf32> to vector<4x32xf32>
    %cst_10 = arith.constant dense<0.000000e+00> : vector<256x32xf32>
    %14 = tpu.matmul %11, %13, %cst_10 {dimension_numbers = #tpu.dot_dimension_numbers<[1], [0], [0], [1], [0, 0, 1, 1], [], []>} : vector<256x4xf32>, vector<4x32xf32>, vector<256x32xf32> -> vector<256x32xf32>
    %15 = arith.addf %8, %14 : vector<256x32xf32>
    %c0_11 = arith.constant 0 : index
    %c0_12 = arith.constant 0 : index
    %c2 = arith.constant 2 : index
    %c0_13 = arith.constant 0 : index
    %16 = vector.load %arg1[%c0_11, %c0_12, %c2, %c0_13] : memref<1x18x18x4xf32, #tpu.memory_space<vmem>>, vector<1x16x16x4xf32>
    %17 = vector.shape_cast %16 : vector<1x16x16x4xf32> to vector<16x16x4xf32>
    %18 = vector.shape_cast %17 : vector<16x16x4xf32> to vector<256x4xf32>
    %19 = vector.extract_strided_slice %0 {offsets = [2, 0, 0], sizes = [1, 4, 32], strides = [1, 1, 1]} : vector<9x4x32xf32> to vector<1x4x32xf32>
    %20 = vector.shape_cast %19 : vector<1x4x32xf32> to vector<4x32xf32>
    %cst_14 = arith.constant dense<0.000000e+00> : vector<256x32xf32>
    %21 = tpu.matmul %18, %20, %cst_14 {dimension_numbers = #tpu.dot_dimension_numbers<[1], [0], [0], [1], [0, 0, 1, 1], [], []>} : vector<256x4xf32>, vector<4x32xf32>, vector<256x32xf32> -> vector<256x32xf32>
    %22 = arith.addf %15, %21 : vector<256x32xf32>
    %c0_15 = arith.constant 0 : index
    %c1_16 = arith.constant 1 : index
    %c0_17 = arith.constant 0 : index
    %c0_18 = arith.constant 0 : index
    %23 = vector.load %arg1[%c0_15, %c1_16, %c0_17, %c0_18] : memref<1x18x18x4xf32, #tpu.memory_space<vmem>>, vector<1x16x16x4xf32>
    %24 = vector.shape_cast %23 : vector<1x16x16x4xf32> to vector<16x16x4xf32>
    %25 = vector.shape_cast %24 : vector<16x16x4xf32> to vector<256x4xf32>
    %26 = vector.extract_strided_slice %0 {offsets = [3, 0, 0], sizes = [1, 4, 32], strides = [1, 1, 1]} : vector<9x4x32xf32> to vector<1x4x32xf32>
    %27 = vector.shape_cast %26 : vector<1x4x32xf32> to vector<4x32xf32>
    %cst_19 = arith.constant dense<0.000000e+00> : vector<256x32xf32>
    %28 = tpu.matmul %25, %27, %cst_19 {dimension_numbers = #tpu.dot_dimension_numbers<[1], [0], [0], [1], [0, 0, 1, 1], [], []>} : vector<256x4xf32>, vector<4x32xf32>, vector<256x32xf32> -> vector<256x32xf32>
    %29 = arith.addf %22, %28 : vector<256x32xf32>
    %c0_20 = arith.constant 0 : index
    %c1_21 = arith.constant 1 : index
    %c1_22 = arith.constant 1 : index
    %c0_23 = arith.constant 0 : index
    %30 = vector.load %arg1[%c0_20, %c1_21, %c1_22, %c0_23] : memref<1x18x18x4xf32, #tpu.memory_space<vmem>>, vector<1x16x16x4xf32>
    %31 = vector.shape_cast %30 : vector<1x16x16x4xf32> to vector<16x16x4xf32>
    %32 = vector.shape_cast %31 : vector<16x16x4xf32> to vector<256x4xf32>
    %33 = vector.extract_strided_slice %0 {offsets = [4, 0, 0], sizes = [1, 4, 32], strides = [1, 1, 1]} : vector<9x4x32xf32> to vector<1x4x32xf32>
    %34 = vector.shape_cast %33 : vector<1x4x32xf32> to vector<4x32xf32>
    %cst_24 = arith.constant dense<0.000000e+00> : vector<256x32xf32>
    %35 = tpu.matmul %32, %34, %cst_24 {dimension_numbers = #tpu.dot_dimension_numbers<[1], [0], [0], [1], [0, 0, 1, 1], [], []>} : vector<256x4xf32>, vector<4x32xf32>, vector<256x32xf32> -> vector<256x32xf32>
    %36 = arith.addf %29, %35 : vector<256x32xf32>
    %c0_25 = arith.constant 0 : index
    %c1_26 = arith.constant 1 : index
    %c2_27 = arith.constant 2 : index
    %c0_28 = arith.constant 0 : index
    %37 = vector.load %arg1[%c0_25, %c1_26, %c2_27, %c0_28] : memref<1x18x18x4xf32, #tpu.memory_space<vmem>>, vector<1x16x16x4xf32>
    %38 = vector.shape_cast %37 : vector<1x16x16x4xf32> to vector<16x16x4xf32>
    %39 = vector.shape_cast %38 : vector<16x16x4xf32> to vector<256x4xf32>
    %40 = vector.extract_strided_slice %0 {offsets = [5, 0, 0], sizes = [1, 4, 32], strides = [1, 1, 1]} : vector<9x4x32xf32> to vector<1x4x32xf32>
    %41 = vector.shape_cast %40 : vector<1x4x32xf32> to vector<4x32xf32>
    %cst_29 = arith.constant dense<0.000000e+00> : vector<256x32xf32>
    %42 = tpu.matmul %39, %41, %cst_29 {dimension_numbers = #tpu.dot_dimension_numbers<[1], [0], [0], [1], [0, 0, 1, 1], [], []>} : vector<256x4xf32>, vector<4x32xf32>, vector<256x32xf32> -> vector<256x32xf32>
    %43 = arith.addf %36, %42 : vector<256x32xf32>
    %c0_30 = arith.constant 0 : index
    %c2_31 = arith.constant 2 : index
    %c0_32 = arith.constant 0 : index
    %c0_33 = arith.constant 0 : index
    %44 = vector.load %arg1[%c0_30, %c2_31, %c0_32, %c0_33] : memref<1x18x18x4xf32, #tpu.memory_space<vmem>>, vector<1x16x16x4xf32>
    %45 = vector.shape_cast %44 : vector<1x16x16x4xf32> to vector<16x16x4xf32>
    %46 = vector.shape_cast %45 : vector<16x16x4xf32> to vector<256x4xf32>
    %47 = vector.extract_strided_slice %0 {offsets = [6, 0, 0], sizes = [1, 4, 32], strides = [1, 1, 1]} : vector<9x4x32xf32> to vector<1x4x32xf32>
    %48 = vector.shape_cast %47 : vector<1x4x32xf32> to vector<4x32xf32>
    %cst_34 = arith.constant dense<0.000000e+00> : vector<256x32xf32>
    %49 = tpu.matmul %46, %48, %cst_34 {dimension_numbers = #tpu.dot_dimension_numbers<[1], [0], [0], [1], [0, 0, 1, 1], [], []>} : vector<256x4xf32>, vector<4x32xf32>, vector<256x32xf32> -> vector<256x32xf32>
    %50 = arith.addf %43, %49 : vector<256x32xf32>
    %c0_35 = arith.constant 0 : index
    %c2_36 = arith.constant 2 : index
    %c1_37 = arith.constant 1 : index
    %c0_38 = arith.constant 0 : index
    %51 = vector.load %arg1[%c0_35, %c2_36, %c1_37, %c0_38] : memref<1x18x18x4xf32, #tpu.memory_space<vmem>>, vector<1x16x16x4xf32>
    %52 = vector.shape_cast %51 : vector<1x16x16x4xf32> to vector<16x16x4xf32>
    %53 = vector.shape_cast %52 : vector<16x16x4xf32> to vector<256x4xf32>
    %54 = vector.extract_strided_slice %0 {offsets = [7, 0, 0], sizes = [1, 4, 32], strides = [1, 1, 1]} : vector<9x4x32xf32> to vector<1x4x32xf32>
    %55 = vector.shape_cast %54 : vector<1x4x32xf32> to vector<4x32xf32>
    %cst_39 = arith.constant dense<0.000000e+00> : vector<256x32xf32>
    %56 = tpu.matmul %53, %55, %cst_39 {dimension_numbers = #tpu.dot_dimension_numbers<[1], [0], [0], [1], [0, 0, 1, 1], [], []>} : vector<256x4xf32>, vector<4x32xf32>, vector<256x32xf32> -> vector<256x32xf32>
    %57 = arith.addf %50, %56 : vector<256x32xf32>
    %c0_40 = arith.constant 0 : index
    %c2_41 = arith.constant 2 : index
    %c2_42 = arith.constant 2 : index
    %c0_43 = arith.constant 0 : index
    %58 = vector.load %arg1[%c0_40, %c2_41, %c2_42, %c0_43] : memref<1x18x18x4xf32, #tpu.memory_space<vmem>>, vector<1x16x16x4xf32>
    %59 = vector.shape_cast %58 : vector<1x16x16x4xf32> to vector<16x16x4xf32>
    %60 = vector.shape_cast %59 : vector<16x16x4xf32> to vector<256x4xf32>
    %61 = vector.extract_strided_slice %0 {offsets = [8, 0, 0], sizes = [1, 4, 32], strides = [1, 1, 1]} : vector<9x4x32xf32> to vector<1x4x32xf32>
    %62 = vector.shape_cast %61 : vector<1x4x32xf32> to vector<4x32xf32>
    %cst_44 = arith.constant dense<0.000000e+00> : vector<256x32xf32>
    %63 = tpu.matmul %60, %62, %cst_44 {dimension_numbers = #tpu.dot_dimension_numbers<[1], [0], [0], [1], [0, 0, 1, 1], [], []>} : vector<256x4xf32>, vector<4x32xf32>, vector<256x32xf32> -> vector<256x32xf32>
    %64 = arith.addf %57, %63 : vector<256x32xf32>
    %c0_45 = arith.constant 0 : index
    %c0_46 = arith.constant 0 : index
    %65 = vector.load %arg3[%c0_45, %c0_46] : memref<1x32xf32, #tpu.memory_space<vmem>>, vector<1x32xf32>
    %66 = vector.broadcast %65 : vector<1x32xf32> to vector<256x32xf32>
    %67 = arith.addf %64, %66 : vector<256x32xf32>
    %cst_47 = arith.constant 0.000000e+00 : f32
    %68 = vector.broadcast %cst_47 : f32 to vector<256x32xf32>
    %69 = arith.maximumf %67, %68 : vector<256x32xf32>
    %cst_48 = arith.constant dense<0.000000e+00> : vector<32xf32>
    %70 = vector.multi_reduction <add>, %69, %cst_48 [0] : vector<256x32xf32> to vector<32xf32>
    %71 = vector.shape_cast %70 : vector<32xf32> to vector<1x32xf32>
    %cst_49 = arith.constant 3.906250e-03 : f32
    %72 = vector.broadcast %cst_49 : f32 to vector<1x32xf32>
    %73 = arith.mulf %71, %72 : vector<1x32xf32>
    %c0_50 = arith.constant 0 : index
    %c0_51 = arith.constant 0 : index
    %74 = vector.load %arg4[%c0_50, %c0_51] : memref<32x64xf32, #tpu.memory_space<vmem>>, vector<32x64xf32>
    %cst_52 = arith.constant dense<0.000000e+00> : vector<1x64xf32>
    %75 = tpu.matmul %73, %74, %cst_52 {dimension_numbers = #tpu.dot_dimension_numbers<[1], [0], [0], [1], [0, 0, 1, 1], [], []>} : vector<1x32xf32>, vector<32x64xf32>, vector<1x64xf32> -> vector<1x64xf32>
    %c0_53 = arith.constant 0 : index
    %c0_54 = arith.constant 0 : index
    %76 = vector.load %arg5[%c0_53, %c0_54] : memref<1x64xf32, #tpu.memory_space<vmem>>, vector<1x64xf32>
    %77 = arith.addf %75, %76 : vector<1x64xf32>
    %cst_55 = arith.constant 0.000000e+00 : f32
    %78 = vector.broadcast %cst_55 : f32 to vector<1x64xf32>
    %79 = arith.maximumf %77, %78 : vector<1x64xf32>
    %c0_56 = arith.constant 0 : index
    %c0_57 = arith.constant 0 : index
    %80 = vector.load %arg6[%c0_56, %c0_57] : memref<64x32xf32, #tpu.memory_space<vmem>>, vector<64x32xf32>
    %cst_58 = arith.constant dense<0.000000e+00> : vector<1x32xf32>
    %81 = tpu.matmul %79, %80, %cst_58 {dimension_numbers = #tpu.dot_dimension_numbers<[1], [0], [0], [1], [0, 0, 1, 1], [], []>} : vector<1x64xf32>, vector<64x32xf32>, vector<1x32xf32> -> vector<1x32xf32>
    %c0_59 = arith.constant 0 : index
    %c0_60 = arith.constant 0 : index
    %82 = vector.load %arg7[%c0_59, %c0_60] : memref<1x32xf32, #tpu.memory_space<vmem>>, vector<1x32xf32>
    %83 = arith.addf %81, %82 : vector<1x32xf32>
    %84 = vector.shape_cast %83 : vector<1x32xf32> to vector<1x1x32xf32>
    %c0_61 = arith.constant 0 : index
    %c0_62 = arith.constant 0 : index
    %c0_63 = arith.constant 0 : index
    %85 = vector.load %arg8[%c0_61, %c0_62, %c0_63] : memref<1x1x32xf32, #tpu.memory_space<vmem>>, vector<1x1x32xf32>
    tpu.vector_store %arg8[%c0_61, %c0_62, %c0_63], %84 {strides = array<i32>} : memref<1x1x32xf32, #tpu.memory_space<vmem>>, vector<1x1x32xf32>,
    return
  }
  func.func @transform_0(%arg0: i32) -> (i32, i32, i32, i32) {
    %c0_i32 = arith.constant 0 : i32
    %c0_i32_0 = arith.constant 0 : i32
    %c0_i32_1 = arith.constant 0 : i32
    %c0_i32_2 = arith.constant 0 : i32
    return %arg0, %c0_i32, %c0_i32_0, %c0_i32_1 : i32, i32, i32, i32
  }
  func.func @transform_1(%arg0: i32) -> (i32, i32, i32) {
    %c0_i32 = arith.constant 0 : i32
    %c0_i32_0 = arith.constant 0 : i32
    %c0_i32_1 = arith.constant 0 : i32
    %c0_i32_2 = arith.constant 0 : i32
    return %c0_i32, %c0_i32_0, %c0_i32_1 : i32, i32, i32
  }
  func.func @transform_2(%arg0: i32) -> (i32, i32) {
    %c0_i32 = arith.constant 0 : i32
    %c0_i32_0 = arith.constant 0 : i32
    %c0_i32_1 = arith.constant 0 : i32
    return %c0_i32, %c0_i32_0 : i32, i32
  }
  func.func @transform_3(%arg0: i32) -> (i32, i32) {
    %c0_i32 = arith.constant 0 : i32
    %c0_i32_0 = arith.constant 0 : i32
    %c0_i32_1 = arith.constant 0 : i32
    return %c0_i32, %c0_i32_0 : i32, i32
  }
  func.func @transform_4(%arg0: i32) -> (i32, i32) {
    %c0_i32 = arith.constant 0 : i32
    %c0_i32_0 = arith.constant 0 : i32
    %c0_i32_1 = arith.constant 0 : i32
    return %c0_i32, %c0_i32_0 : i32, i32
  }
  func.func @transform_5(%arg0: i32) -> (i32, i32) {
    %c0_i32 = arith.constant 0 : i32
    %c0_i32_0 = arith.constant 0 : i32
    %c0_i32_1 = arith.constant 0 : i32
    return %c0_i32, %c0_i32_0 : i32, i32
  }
  func.func @transform_6(%arg0: i32) -> (i32, i32) {
    %c0_i32 = arith.constant 0 : i32
    %c0_i32_0 = arith.constant 0 : i32
    %c0_i32_1 = arith.constant 0 : i32
    return %c0_i32, %c0_i32_0 : i32, i32
  }
  func.func @transform_7(%arg0: i32) -> (i32, i32, i32) {
    %c0_i32 = arith.constant 0 : i32
    %c0_i32_0 = arith.constant 0 : i32
    %c0_i32_1 = arith.constant 0 : i32
    return %arg0, %c0_i32, %c0_i32_0 : i32, i32, i32
  }
}

</mosaic_0001>

<bundles_post_ra>
// kernel: simclr_forward.1
= control target key start
LH: loop header
LB: loop body
LE: loop exit
PB: predicated region body
PF: predicated region fallthrough
CT: control target
= control target key end

     0   :  { %12 = vsyncpa [#allocation3], 0  ;;  %s7020_s0 = inlined_call_operand.vmem [shape: f32[2,18,18,4], index: 0, kind: input, shape index: {}]   ;;  %s7021_s1 = inlined_call_operand.vmem [shape: f32[9,4,32], index: 1, kind: input, shape index: {}]   ;;  %s7022_s2 = inlined_call_operand.vmem [shape: f32[1,32], index: 2, kind: input, shape index: {}]   ;;  %s7023_s3 = inlined_call_operand.vmem [shape: f32[32,64], index: 3, kind: input, shape index: {}]   ;;  %s7024_s4 = inlined_call_operand.vmem [shape: f32[1,64], index: 4, kind: input, shape index: {}]   ;;  %s7025_s5 = inlined_call_operand.vmem [shape: f32[64,32], index: 5, kind: input, shape index: {}]   ;;  %s7026_s6 = inlined_call_operand.vmem [shape: f32[1,32], index: 6, kind: input, shape index: {}]   ;;  %s7027_s7 = inlined_call_operand.hbm [shape: f32[2,1,32], index: 7, kind: output, shape index: {}]  }
   0x1   :  { %14 = vsyncpa [#allocation3 + $0x1], 0  ;;  %s5809_s24 = smov 0   ;;  %s5811_s25 = smov 0  }
   0x2   :  { %s5813_s26 = smov 0   ;;  %s5815_s27 = smov 0  }
   0x3 LB: > { %s5830_s28 = sadd.s32 4294967295, %s5763_s27   ;;  %s4091_s29 = sadd.s32 4294967294, %s5763_s27   ;;  %s5763_s27 = sphi %s5815_s27, %s7135_s27   ;;  %s5759_s26 = sphi %s5813_s26, %s7134_s26   ;;  %s5755_s25 = sphi %s5811_s25, %s7133_s25   ;;  %s5751_s24 = sphi %s5809_s24, %s7132_s24  }
   0x4   : > { %s5834_s30 = sadd.s32 1, %s5763_s27   ;;  %s179_s8 = sadd.s32 1, %s5759_s26 }
   0x5   : > { %s176_s9 = ssub.s32 %s5763_s27, %s5834_s30  ;;  %p189_p0 = scmp.ne.s32.totalorder %s5759_s26, %s5755_s25 }
   0x6   : > { %p177_p1 = scmp.eq.s32.totalorder %s176_s9, 0  ;;  %p190_p2 = scmp.eq.s32.totalorder %s5830_s28, 1 }
   0x7   : > { %p195_p3 = scmp.ne.s32.totalorder %s5755_s25, %s5751_s24  ;;  %p196_p4 = scmp.eq.s32.totalorder %s4091_s29, 1 }
   0x8   : > { %s5845_s10 = scalar_select %p177_p1, %s5759_s26, %s179_s8  }
   0x9   : > { %p5847_p5 = por %p190_p2, %p189_p0  ;;  %p5851_p6 = por %p196_p4, %p195_p3 }
   0xa   : > { %p4094_p7 = scmp.ge.s32.totalorder %s5763_s27, 1  ;;  %p240_p8 = scmp.lt.s32.totalorder %s5763_s27, 3 }
   0xc   : > { %p241_p9 = pnand %p4094_p7, %p240_p8 }
   0xe   : > { %244 = sbr.rel (%p241_p9) target bundleno = 1008 (0x3f0), region = 48 }
  0x15   : > { %v5860_v0 = vld [vmem:[%s7021_s1 + $0x10] sm:$0xf]  ;;  %vm446_vm0 = vcmask 1043456   ;;  %v277_v1 = vld [vmem:[%s7021_s1 + $0x4] sm:$0xf]  ;;  %p271_p10 = scmp.lt.s32.totalorder %s5830_s28, 1 }
  0x16   : > { %5102 = vmatprep.subr.msk.mxu0 %vm446_vm0, %v5860_v0  ;;  %4902 = vmatprep.subr.msk.mxu1 %vm446_vm0, %v277_v1  ;;  %v281_v2 = vld [vmem:[%s7021_s1 + $0x14] sm:$0xf]  ;;  %v276_v3 = vld [vmem:[%s7021_s1] sm:$0xf]  ;;  %vm349_vm1 = vcmask 31744   ;;  %vm5766_vm2 = vmmov 0  }
  0x17   : > { %5103 = vmatpush3.msk.msra.mxu0 %vm446_vm0, %v5860_v0  ;;  %4903 = vmatpush3.msk.msra.mxu1 %vm446_vm0, %v277_v1  ;;  %s272_s21 = scalar_select %p271_p10, %s5830_s28, 1  ;;  %v5900_v9 = vld [vmem:[%s7021_s1 + $0x18] sm:$0xf]  ;;  %v5905_v10 = vld [vmem:[%s7021_s1 + $0x8] sm:$0xf]  ;;  %vm3788_vm3 = vcmask 261120  }
  0x18   : > { %5152 = vmatprep.subr.msk.mxu0 %vm446_vm0, %v281_v2  ;;  %4952 = vmatprep.subr.msk.mxu1 %vm446_vm0, %v276_v3  ;;  %v6067_v34 = vld [vmem:[%s7021_s1 + $0x1c] sm:$0xf]  ;;  %v6174_v55 = vld [vmem:[%s7021_s1 + $0xc] sm:$0xf]  ;;  %vm3947_vm4 = vcmask 523264   ;;  %s4588_s9 = sshll.u32 %s5830_s28, 4 }
  0x19   : > { %s5658_s22 = smul.u32 432, %s272_s21  ;;  %vm4021_vm5 = vcmask 253952   ;;  %s6978_s16 = scalar_lea.hbm %s7027_s7, %s4588_s9 }
  0x1a   : > { %s5768_s28 = smov [#allocation2]  }
  0x1b   : > { %s5884_s8 = scalar_lea.vmem %s7020_s0, %s5658_s22  ;;  %s269_s22 = sand.u32 1, %s5755_s25  }
  0x1c   : > { %v317_v4 = vld [vmem:[%s5884_s8 + $0x1] sm:$0xff]  ;;  %v4260_v5 = vld [vmem:[%s5884_s8 + $0x19] sm:$0xff]  ;;  %v318_v6 = vld [vmem:[%s5884_s8 + $0x9] sm:$0xff]  ;;  %s270_s13 = scalar_lea.vmem [#allocation2], %s269_s22  ;;  %s4024_s17 = scalar_lea.sflag [#allocation3], %s269_s22 }
  0x1d   : > { %4904 = vmatprep.mubr.msk.f32.mxu1 %vm349_vm1, %v317_v4  ;;  %5104 = vmatprep.mubr.msk.f32.mxu0 %vm349_vm1, %v4260_v5  ;;  %v4261_v7 = vld [vmem:[%s5884_s8 + $0x21] sm:$0xff]  ;;  %v5893_v8 = vld [vmem:[%s5884_s8 + $0x31] sm:$0xff]  ;;  %v5910_v11 = vld [vmem:[%s5884_s8 + $0x39] sm:$0xff]  ;;  %s4036_s14 = sshll.u32 %s270_s13, 4  ;;  %s5705_s19 = sshll.u32 %s5768_s28, 4  ;;  %s6980_s14 = int_to_ptr.vmem [resolvable:$true] %s4036_s14  ;;  %s5706_s19 = int_to_ptr.vmem [resolvable:$false] %s5705_s19 }
  0x1e   : > { %4905 = vmatmul.mubr.msk.f32.vlgmr.msra.gmra.mrb[0].mxu1 %vm349_vm1, %v318_v6  ;;  %5105 = vmatmul.mubr.msk.f32.vlgmr.msra.gmra.mrb[0].mxu0 %vm349_vm1, %v4261_v7  ;;  %v5915_v12 = vld [vmem:[%s5884_s8 + $0x49] sm:$0xff]  ;;  %v5930_v13 = vld [vmem:[%s5884_s8 + $0x51] sm:$0xff]  ;;  %v5933_v14 = vld [vmem:[%s5884_s8 + $0x61] sm:$0xff]  ;;  %s5701_s18 = scalar_lea.vmem %s6980_s14, 16  ;;  %s5707_s20 = scalar_lea.vmem %s5706_s19, 32 }
  0x1f   : > { %5153 = vmatpush3.msk.msra.mxu0 %vm446_vm0, %v281_v2  ;;  %4907 = vmatprep.mubr.msk.f32.mxu1 %vm349_vm1, %v4260_v5  ;;  %v5944_v15 = vld [vmem:[%s5884_s8 + $0x69] sm:$0xff]  ;;  %v5947_v16 = vld [vmem:[%s5884_s8 + $0x79] sm:$0xff]  ;;  %v5958_v17 = vld [vmem:[%s5884_s8 + $0x81] sm:$0xff]  ;;  %p5702_p11 = scmp.ne.s32.totalorder %s6980_s14, %s5701_s18  ;;  %p5708_p0 = scmp.lt.s32.totalorder %s6980_s14, %s5706_s19 }
  0x20   : > { %5107 = vmatprep.mubr.msk.f32.mxu0 %vm349_vm1, %v5893_v8  ;;  %4953 = vmatpush3.msk.msra.mxu1 %vm446_vm0, %v276_v3  ;;  %v5961_v18 = vld [vmem:[%s5884_s8 + $0x91] sm:$0xff]  ;;  %v5972_v19 = vld [vmem:[%s5884_s8 + $0x99] sm:$0xff]  ;;  %v5975_v20 = vld [vmem:[%s5884_s8 + $0xa9] sm:$0xff]  ;;  %p5709_p1 = scmp.lt.s32.totalorder %s5707_s20, %s5701_s18 }
  0x21   : > { %5202 = vmatprep.subr.msk.mxu0 %vm446_vm0, %v5900_v9  ;;  %5002 = vmatprep.subr.msk.mxu1 %vm446_vm0, %v5905_v10  ;;  %7070 = vst [vmem:[#allocation5_spill] sm:$0xff] %v5972_v19  ;;  %7071 = vst [vmem:[#allocation6_spill] sm:$0xff] %v5975_v20  ;;  %v5986_v21 = vld [vmem:[%s5884_s8 + $0xb1] sm:$0xff]  ;;  %v5989_v22 = vld [vmem:[%s5884_s8 + $0xc1] sm:$0xff]  ;;  %p5703_p12 = pnand %p5702_p11, %p5847_p5 }
  0x22   : > { %4908 = vmatmul.mubr.msk.f32.gmra.mrb[2].mxu1 %vm349_vm1, %v4261_v7  ;;  %5108 = vmatmul.mubr.msk.f32.gmra.mrb[2].mxu0 %vm349_vm1, %v5910_v11  ;;  %7072 = vst [vmem:[#allocation7_spill] sm:$0xff] %v5986_v21  ;;  %7073 = vst [vmem:[#allocation8_spill] sm:$0xff] %v5989_v22  ;;  %v6000_v23 = vld [vmem:[%s5884_s8 + $0xc9] sm:$0xff]  ;;  %v6003_v24 = vld [vmem:[%s5884_s8 + $0xd9] sm:$0xff]  ;;  %p5710_p2 = por %p5709_p1, %p5708_p0 }
  0x23   : > { %4910 = vmatprep.mubr.msk.f32.mxu1 %vm349_vm1, %v5893_v8  ;;  %5110 = vmatprep.mubr.msk.f32.mxu0 %vm349_vm1, %v5915_v12  ;;  %7074 = vst [vmem:[#allocation9_spill] sm:$0xff] %v6000_v23  ;;  %7075 = vst [vmem:[#allocation10_spill] sm:$0xff] %v6003_v24  ;;  %v6014_v25 = vld [vmem:[%s5884_s8 + $0xe1] sm:$0xff]  ;;  %v6017_v26 = vld [vmem:[%s5884_s8 + $0xf1] sm:$0xff]  ;;  %p5704_p13 = pneg %p5703_p12 }
  0x24   : > { %7076 = vst [vmem:[#allocation11_spill] sm:$0xff] %v6014_v25  ;;  %7077 = vst [vmem:[#allocation12_spill] sm:$0xff] %v6017_v26  ;;  %v6028_v27 = vld [vmem:[%s5884_s8 + $0xf9] sm:$0xff]  ;;  %v6031_v28 = vld [vmem:[%s5884_s8 + $0x109] sm:$0xff] }
  0x25   : > { %7078 = vst [vmem:[#allocation13_spill] sm:$0xff] %v6028_v27  ;;  %7079 = vst [vmem:[#allocation14_spill] sm:$0xff] %v6031_v28  ;;  %v6042_v29 = vld [vmem:[%s5884_s8 + $0x111] sm:$0xff]  ;;  %v6045_v30 = vld [vmem:[%s5884_s8 + $0x1a] sm:$0xff]  ;;  %p5711_p3 = pnand %p5710_p2, %p5704_p13 }
  0x26   : > { %4911 = vmatmul.mubr.msk.f32.gmra.mrb[4].mxu1 %vm349_vm1, %v5910_v11  ;;  %5111 = vmatmul.mubr.msk.f32.gmra.mrb[4].mxu0 %vm349_vm1, %v5930_v13  ;;  %7080 = vst [vmem:[#allocation15_spill] sm:$0xff] %v6042_v29  ;;  %v6056_v31 = vld [vmem:[%s5884_s8 + $0x22] sm:$0xff]  ;;  %v6062_v33 = vld [vmem:[%s5884_s8 + $0x32] sm:$0xff]  ;;  %v6081_v36 = vld [vmem:[%s5884_s8 + $0x3a] sm:$0xff] }
  0x27   : > { %4913 = vmatprep.mubr.msk.f32.mxu1 %vm349_vm1, %v5915_v12  ;;  %5113 = vmatprep.mubr.msk.f32.mxu0 %vm349_vm1, %v5933_v14  ;;  %v6059_v32 = vld [vmem:[%s5884_s8 + $0x121] sm:$0xff]  ;;  %v6078_v35 = vld [vmem:[%s5884_s8 + $0x129] sm:$0xff]  ;;  %v6086_v37 = vld [vmem:[%s5884_s8 + $0x139] sm:$0xff] }
  0x28   : > { %7081 = vst [vmem:[#allocation16_spill] sm:$0xff] %v6059_v32  ;;  %7082 = vst [vmem:[#allocation17_spill] sm:$0xff] %v6078_v35  ;;  %v6089_v38 = vld [vmem:[%s5884_s8 + $0x4a] sm:$0xff]  ;;  %v6102_v39 = vld [vmem:[%s5884_s8 + $0x141] sm:$0xff] }
  0x29   : > { %7083 = vst [vmem:[#allocation18_spill] sm:$0xff] %v6086_v37  ;;  %7084 = vst [vmem:[#allocation19_spill] sm:$0xff] %v6102_v39  ;;  %v6105_v40 = vld [vmem:[%s5884_s8 + $0x52] sm:$0xff]  ;;  %v6111_v42 = vld [vmem:[%s5884_s8 + $0x62] sm:$0xff] }
  0x2a   : > { %4914 = vmatmul.mubr.msk.f32.gmra.mrb[6].mxu1 %vm349_vm1, %v5930_v13  ;;  %5114 = vmatmul.mubr.msk.f32.gmra.mrb[6].mxu0 %vm349_vm1, %v5944_v15  ;;  %v6108_v41 = vld [vmem:[%s5884_s8 + $0x151] sm:$0xff]  ;;  %v6122_v43 = vld [vmem:[%s5884_s8 + $0x159] sm:$0xff]  ;;  %v6128_v45 = vld [vmem:[%s5884_s8 + $0x169] sm:$0xff] }
  0x2b   : > { %4916 = vmatprep.mubr.msk.f32.mxu1 %vm349_vm1, %v5933_v14  ;;  %5116 = vmatprep.mubr.msk.f32.mxu0 %vm349_vm1, %v5947_v16  ;;  %7085 = vst [vmem:[#allocation20_spill] sm:$0xff] %v6108_v41  ;;  %7086 = vst [vmem:[#allocation21_spill] sm:$0xff] %v6122_v43  ;;  %v6125_v44 = vld [vmem:[%s5884_s8 + $0x6a] sm:$0xff]  ;;  %v6131_v46 = vld [vmem:[%s5884_s8 + $0x7a] sm:$0xff] }
  0x2c   : > { %7087 = vst [vmem:[#allocation22_spill] sm:$0xff] %v6128_v45  ;;  %v6142_v47 = vld [vmem:[%s5884_s8 + $0x171] sm:$0xff]  ;;  %v6145_v48 = vld [vmem:[%s5884_s8 + $0x82] sm:$0xff]  ;;  %v6160_v52 = vld [vmem:[%s5884_s8 + $0x9a] sm:$0xff] }
  0x2d   : > { %7088 = vst [vmem:[#allocation23_spill] sm:$0xff] %v6142_v47  ;;  %v285_v49 = vld [vmem:[%s5884_s8] sm:$0xff]  ;;  %v6149_v50 = vld [vmem:[%s5884_s8 + $0x92] sm:$0xff]  ;;  %v286_v51 = vld [vmem:[%s5884_s8 + $0x8] sm:$0xff] }
  0x2e   : > { %4917 = vmatmul.mubr.msk.f32.gmra.mrb[8].mxu1 %vm349_vm1, %v5944_v15  ;;  %5117 = vmatmul.mubr.msk.f32.gmra.mrb[8].mxu0 %vm349_vm1, %v5958_v17  ;;  %v6163_v53 = vld [vmem:[%s5884_s8 + $0x18] sm:$0xff]  ;;  %v6166_v54 = vld [vmem:[%s5884_s8 + $0xaa] sm:$0xff]  ;;  %v6181_v56 = vld [vmem:[%s5884_s8 + $0x20] sm:$0xff] }
  0x2f   : > { %4919 = vmatprep.mubr.msk.f32.mxu1 %vm349_vm1, %v5947_v16  ;;  %5119 = vmatprep.mubr.msk.f32.mxu0 %vm349_vm1, %v5961_v18  ;;  %7089 = vst [vmem:[#allocation24_spill] sm:$0xff] %v6163_v53  ;;  %7090 = vst [vmem:[#allocation25_spill] sm:$0xff] %v6181_v56  ;;  %v6184_v57 = vld [vmem:[%s5884_s8 + $0xb2] sm:$0xff]  ;;  %v6190_v59 = vld [vmem:[%s5884_s8 + $0xc2] sm:$0xff] }
  0x30   : > { %v6187_v58 = vld [vmem:[%s5884_s8 + $0x30] sm:$0xff]  ;;  %v6205_v60 = vld [vmem:[%s5884_s8 + $0x38] sm:$0xff]  ;;  %v6211_v62 = vld [vmem:[%s5884_s8 + $0x48] sm:$0xff] }
  0x31   : > { %7091 = vst [vmem:[#allocation26_spill] sm:$0xff] %v6187_v58  ;;  %7092 = vst [vmem:[#allocation27_spill] sm:$0xff] %v6205_v60  ;;  %v6208_v61 = vld [vmem:[%s5884_s8 + $0xca] sm:$0xff]  ;;  %v6214_v63 = vld [vmem:[%s5884_s8 + $0xda] sm:$0xff] }
  0x32   : > { %4920 = vmatmul.mubr.msk.f32.gmra.mrb[10].mxu1 %vm349_vm1, %v5958_v17  ;;  %5120 = vmatmul.mubr.msk.f32.gmra.mrb[10].mxu0 %vm349_vm1, %v5972_v19  ;;  %7093 = vst [vmem:[#allocation28_spill] sm:$0xff] %v6211_v62  ;;  %v6225_v1 = vld [vmem:[%s5884_s8 + $0x50] sm:$0xff]  ;;  %v6228_v2 = vld [vmem:[%s5884_s8 + $0xe2] sm:$0xff]  ;;  %v6248_v6 = vld [vmem:[%s5884_s8 + $0xfa] sm:$0xff] }
  0x33   : > { %4922 = vmatprep.mubr.msk.f32.mxu1 %vm349_vm1, %v5961_v18  ;;  %5122 = vmatprep.mubr.msk.f32.mxu0 %vm349_vm1, %v5975_v20  ;;  %7094 = vst [vmem:[#allocation29_spill] sm:$0xff] %v6225_v1  ;;  %v6231_v3 = vld [vmem:[%s5884_s8 + $0x60] sm:$0xff]  ;;  %v6234_v4 = vld [vmem:[%s5884_s8 + $0xf2] sm:$0xff]  ;;  %v6245_v5 = vld [vmem:[%s5884_s8 + $0x68] sm:$0xff] }
  0x34   : > { %7095 = vst [vmem:[#allocation30_spill] sm:$0xff] %v6231_v3  ;;  %7096 = vst [vmem:[#allocation31_spill] sm:$0xff] %v6245_v5  ;;  %v6251_v7 = vld [vmem:[%s5884_s8 + $0x78] sm:$0xff] }
  0x36   : > { %4923 = vmatmul.mubr.msk.f32.gmra.mrb[12].mxu1 %vm349_vm1, %v5972_v19  ;;  %5123 = vmatmul.mubr.msk.f32.gmra.mrb[12].mxu0 %vm349_vm1, %v5986_v21  ;;  %v6385_v19 = vld [vmem:[%s5884_s8 + $0x120] sm:$0xff] }
  0x37   : > { %4925 = vmatprep.mubr.msk.f32.mxu1 %vm349_vm1, %v5975_v20  ;;  %5125 = vmatprep.mubr.msk.f32.mxu0 %vm349_vm1, %v5989_v22  ;;  %v6368_v20 = vld [vmem:[%s5884_s8 + $0x18a] sm:$0xff] }
  0x38   : > { %7100 = vst [vmem:[#allocation35_spill] sm:$0xff] %v6368_v20 }
  0x3a   : > { %4926 = vmatmul.mubr.msk.f32.gmra.mrb[14].mxu1 %vm349_vm1, %v5986_v21  ;;  %5126 = vmatmul.mubr.msk.f32.gmra.mrb[14].mxu0 %vm349_vm1, %v6000_v23  ;;  %v6354_v21 = vld [vmem:[%s5884_s8 + $0x182] sm:$0xff] }
  0x3b   : > { %4928 = vmatprep.mubr.msk.f32.mxu1 %vm349_vm1, %v5989_v22  ;;  %5128 = vmatprep.mubr.msk.f32.mxu0 %vm349_vm1, %v6003_v24  ;;  %v6351_v22 = vld [vmem:[%s5884_s8 + $0xf0] sm:$0xff]  ;;  %7099 = vst [vmem:[#allocation34_spill] sm:$0xff] %v6354_v21 }
  0x3e   : > { %4929 = vmatmul.mubr.msk.f32.gmra.mrb[16].mxu1 %vm349_vm1, %v6000_v23  ;;  %5129 = vmatmul.mubr.msk.f32.gmra.mrb[16].mxu0 %vm349_vm1, %v6014_v25  ;;  %v6348_v23 = vld [vmem:[%s5884_s8 + $0x172] sm:$0xff] }
  0x3f   : > { %4931 = vmatprep.mubr.msk.f32.mxu1 %vm349_vm1, %v6003_v24  ;;  %5131 = vmatprep.mubr.msk.f32.mxu0 %vm349_vm1, %v6017_v26  ;;  %v6345_v24 = vld [vmem:[%s5884_s8 + $0xe0] sm:$0xff]  ;;  %7098 = vst [vmem:[#allocation33_spill] sm:$0xff] %v6348_v23 }
  0x42   : > { %4932 = vmatmul.mubr.msk.f32.gmra.mrb[18].mxu1 %vm349_vm1, %v6014_v25  ;;  %5132 = vmatmul.mubr.msk.f32.gmra.mrb[18].mxu0 %vm349_vm1, %v6028_v27  ;;  %v6334_v25 = vld [vmem:[%s5884_s8 + $0x16a] sm:$0xff] }
  0x43   : > { %4934 = vmatprep.mubr.msk.f32.mxu1 %vm349_vm1, %v6017_v26  ;;  %5134 = vmatprep.mubr.msk.f32.mxu0 %vm349_vm1, %v6031_v28  ;;  %v6331_v26 = vld [vmem:[%s5884_s8 + $0xd8] sm:$0xff] }
  0x46   : > { %4935 = vmatmul.mubr.msk.f32.gmra.mrb[20].mxu1 %vm349_vm1, %v6028_v27  ;;  %5135 = vmatmul.mubr.msk.f32.gmra.mrb[20].mxu0 %vm349_vm1, %v6042_v29  ;;  %v6328_v27 = vld [vmem:[%s5884_s8 + $0x15a] sm:$0xff] }
  0x47   : > { %4937 = vmatprep.mubr.msk.f32.mxu1 %vm349_vm1, %v6031_v28  ;;  %5154 = vmatprep.mubr.msk.f32.mxu0 %vm349_vm1, %v6045_v30  ;;  %v6325_v28 = vld [vmem:[%s5884_s8 + $0xc8] sm:$0xff] }
  0x4a   : > { %4938 = vmatmul.mubr.msk.f32.gmra.mrb[22].mxu1 %vm349_vm1, %v6042_v29  ;;  %5155 = vmatmul.mubr.msk.f32.vlgmr.msra.gmra.mrb[0].mxu0 %vm349_vm1, %v6056_v31  ;;  %v6314_v29 = vld [vmem:[%s5884_s8 + $0x152] sm:$0xff] }
  0x4b   : > { %5203 = vmatpush3.msk.msra.mxu0 %vm446_vm0, %v5900_v9  ;;  %4940 = vmatprep.mubr.msk.f32.mxu1 %vm349_vm1, %v6059_v32  ;;  %v6254_v9 = vld [vmem:[%s5884_s8 + $0x10a] sm:$0xff]  ;;  %v6311_v32 = vld [vmem:[%s5884_s8 + $0xc0] sm:$0xff] }
  0x4c   : > { %5157 = vmatprep.mubr.msk.f32.mxu0 %vm349_vm1, %v6062_v33  ;;  %5252 = vmatprep.subr.msk.mxu0 %vm446_vm0, %v6067_v34 }
  0x4e   : > { %4941 = vmatmul.mubr.msk.f32.gmra.mrb[24].mxu1 %vm349_vm1, %v6078_v35  ;;  %5158 = vmatmul.mubr.msk.f32.gmra.mrb[2].mxu0 %vm349_vm1, %v6081_v36  ;;  %v6308_v35 = vld [vmem:[%s5884_s8 + $0x142] sm:$0xff] }
  0x4f   : > { %4943 = vmatprep.mubr.msk.f32.mxu1 %vm349_vm1, %v6086_v37  ;;  %5160 = vmatprep.mubr.msk.f32.mxu0 %vm349_vm1, %v6089_v38  ;;  %v6305_v37 = vld [vmem:[%s5884_s8 + $0xb0] sm:$0xff] }
  0x52   : > { %4944 = vmatmul.mubr.msk.f32.gmra.mrb[26].mxu1 %vm349_vm1, %v6102_v39  ;;  %5161 = vmatmul.mubr.msk.f32.gmra.mrb[4].mxu0 %vm349_vm1, %v6105_v40  ;;  %v6294_v39 = vld [vmem:[%s5884_s8 + $0x13a] sm:$0xff] }
  0x53   : > { %4946 = vmatprep.mubr.msk.f32.mxu1 %vm349_vm1, %v6108_v41  ;;  %5163 = vmatprep.mubr.msk.f32.mxu0 %vm349_vm1, %v6111_v42  ;;  %v6291_v41 = vld [vmem:[%s5884_s8 + $0xa8] sm:$0xff] }
  0x56   : > { %4947 = vmatmul.mubr.msk.f32.gmra.mrb[28].mxu1 %vm349_vm1, %v6122_v43  ;;  %5164 = vmatmul.mubr.msk.f32.gmra.mrb[6].mxu0 %vm349_vm1, %v6125_v44  ;;  %v6288_v43 = vld [vmem:[%s5884_s8 + $0x12a] sm:$0xff] }
  0x57   : > { %4949 = vmatprep.mubr.msk.f32.mxu1 %vm349_vm1, %v6128_v45  ;;  %5166 = vmatprep.mubr.msk.f32.mxu0 %vm349_vm1, %v6131_v46  ;;  %v6285_v45 = vld [vmem:[%s5884_s8 + $0x98] sm:$0xff] }
  0x5a   : > { %4950 = vmatmul.mubr.msk.f32.gmra.mrb[30].mxu1 %vm349_vm1, %v6142_v47  ;;  %5167 = vmatmul.mubr.msk.f32.gmra.mrb[8].mxu0 %vm349_vm1, %v6145_v48  ;;  %v6274_v47 = vld [vmem:[%s5884_s8 + $0x122] sm:$0xff] }
  0x5b   : > { %4954 = vmatprep.mubr.msk.f32.mxu1 %vm349_vm1, %v285_v49  ;;  %5169 = vmatprep.mubr.msk.f32.mxu0 %vm349_vm1, %v6149_v50  ;;  %v6268_v49 = vld [vmem:[%s5884_s8 + $0x112] sm:$0xff] }
  0x5e   : > { %4955 = vmatmul.mubr.msk.f32.vlgmr.msra.gmra.mrb[0].mxu1 %vm349_vm1, %v286_v51  ;;  %5170 = vmatmul.mubr.msk.f32.gmra.mrb[10].mxu0 %vm349_vm1, %v6160_v52  ;;  %v6271_v51 = vld [vmem:[%s5884_s8 + $0x90] sm:$0xff] }
  0x5f   : > { %4957 = vmatprep.mubr.msk.f32.mxu1 %vm349_vm1, %v6163_v53  ;;  %5172 = vmatprep.mubr.msk.f32.mxu0 %vm349_vm1, %v6166_v54  ;;  %v6371_v53 = vld [vmem:[%s5884_s8 + $0x108] sm:$0xff] }
  0x60   : > { %5003 = vmatpush3.msk.msra.mxu1 %vm446_vm0, %v5905_v10  ;;  %v6265_v10 = vld [vmem:[%s5884_s8 + $0x80] sm:$0xff] }
  0x61   : > { %5052 = vmatprep.subr.msk.mxu1 %vm446_vm0, %v6174_v55  ;;  %7097 = vst [vmem:[#allocation32_spill] sm:$0xff] %v6265_v10 }
  0x62   : > { %4958 = vmatmul.mubr.msk.f32.gmra.mrb[2].mxu1 %vm349_vm1, %v6181_v56  ;;  %5173 = vmatmul.mubr.msk.f32.gmra.mrb[12].mxu0 %vm349_vm1, %v6184_v57  ;;  %v6365_v56 = vld [vmem:[%s5884_s8 + $0xf8] sm:$0xff] }
  0x63   : > { %4960 = vmatprep.mubr.msk.f32.mxu1 %vm349_vm1, %v6187_v58  ;;  %5175 = vmatprep.mubr.msk.f32.mxu0 %vm349_vm1, %v6190_v59 }
  0x66   : > { %4961 = vmatmul.mubr.msk.f32.gmra.mrb[4].mxu1 %vm349_vm1, %v6205_v60  ;;  %5176 = vmatmul.mubr.msk.f32.gmra.mrb[14].mxu0 %vm349_vm1, %v6208_v61 }
  0x67   : > { %4963 = vmatprep.mubr.msk.f32.mxu1 %vm349_vm1, %v6211_v62  ;;  %5178 = vmatprep.mubr.msk.f32.mxu0 %vm349_vm1, %v6214_v63 }
  0x6a   : > { %4964 = vmatmul.mubr.msk.f32.gmra.mrb[6].mxu1 %vm349_vm1, %v6225_v1  ;;  %5179 = vmatmul.mubr.msk.f32.gmra.mrb[16].mxu0 %vm349_vm1, %v6228_v2 }
  0x6b   : > { %4966 = vmatprep.mubr.msk.f32.mxu1 %vm349_vm1, %v6231_v3  ;;  %5181 = vmatprep.mubr.msk.f32.mxu0 %vm349_vm1, %v6234_v4 }
  0x6e   : > { %4967 = vmatmul.mubr.msk.f32.gmra.mrb[8].mxu1 %vm349_vm1, %v6245_v5  ;;  %5182 = vmatmul.mubr.msk.f32.gmra.mrb[18].mxu0 %vm349_vm1, %v6248_v6 }
  0x6f   : > { %4969 = vmatprep.mubr.msk.f32.mxu1 %vm349_vm1, %v6251_v7  ;;  %5184 = vmatprep.mubr.msk.f32.mxu0 %vm349_vm1, %v6254_v9 }
  0x72   : > { %4970 = vmatmul.mubr.msk.f32.gmra.mrb[10].mxu1 %vm349_vm1, %v6265_v10  ;;  %5185 = vmatmul.mubr.msk.f32.gmra.mrb[20].mxu0 %vm349_vm1, %v6268_v49 }
  0x73   : > { %4972 = vmatprep.mubr.msk.f32.mxu1 %vm349_vm1, %v6271_v51  ;;  %5187 = vmatprep.mubr.msk.f32.mxu0 %vm349_vm1, %v6274_v47 }
  0x76   : > { %4973 = vmatmul.mubr.msk.f32.gmra.mrb[12].mxu1 %vm349_vm1, %v6285_v45  ;;  %5188 = vmatmul.mubr.msk.f32.gmra.mrb[22].mxu0 %vm349_vm1, %v6288_v43 }
  0x77   : > { %4975 = vmatprep.mubr.msk.f32.mxu1 %vm349_vm1, %v6291_v41  ;;  %5190 = vmatprep.mubr.msk.f32.mxu0 %vm349_vm1, %v6294_v39 }
  0x7a   : > { %4976 = vmatmul.mubr.msk.f32.gmra.mrb[14].mxu1 %vm349_vm1, %v6305_v37  ;;  %5191 = vmatmul.mubr.msk.f32.gmra.mrb[24].mxu0 %vm349_vm1, %v6308_v35 }
  0x7b   : > { %4978 = vmatprep.mubr.msk.f32.mxu1 %vm349_vm1, %v6311_v32  ;;  %5193 = vmatprep.mubr.msk.f32.mxu0 %vm349_vm1, %v6314_v29 }
  0x7e   : > { %4979 = vmatmul.mubr.msk.f32.gmra.mrb[16].mxu1 %vm349_vm1, %v6325_v28  ;;  %5194 = vmatmul.mubr.msk.f32.gmra.mrb[26].mxu0 %vm349_vm1, %v6328_v27 }
  0x7f   : > { %4981 = vmatprep.mubr.msk.f32.mxu1 %vm349_vm1, %v6331_v26  ;;  %5196 = vmatprep.mubr.msk.f32.mxu0 %vm349_vm1, %v6334_v25 }
  0x82   : > { %4982 = vmatmul.mubr.msk.f32.gmra.mrb[18].mxu1 %vm349_vm1, %v6345_v24  ;;  %5197 = vmatmul.mubr.msk.f32.gmra.mrb[28].mxu0 %vm349_vm1, %v6348_v23  ;;  %v6390_v23 = vld [vmem:[%s7021_s1 + $0x20] sm:$0xf] }
  0x83   : > { %4984 = vmatprep.mubr.msk.f32.mxu1 %vm349_vm1, %v6351_v22  ;;  %5199 = vmatprep.mubr.msk.f32.mxu0 %vm349_vm1, %v6354_v21  ;;  %v6382_v21 = vld [vmem:[%s5884_s8 + $0x110] sm:$0xff] }
  0x86   : > { %4985 = vmatmul.mubr.msk.f32.gmra.mrb[20].mxu1 %vm349_vm1, %v6365_v56  ;;  %5200 = vmatmul.mubr.msk.f32.gmra.mrb[30].mxu0 %vm349_vm1, %v6368_v20  ;;  %v6401_v20 = vld [vmem:[%s5884_s8 + $0x128] sm:$0xff] }
  0x87   : > { %4987 = vmatprep.mubr.msk.f32.mxu1 %vm349_vm1, %v6371_v53  ;;  %5204 = vmatprep.mubr.msk.f32.mxu0 %vm349_vm1, %v6187_v58  ;;  %v6406_v58 = vld [vmem:[%s5884_s8 + $0x138] sm:$0xff] }
  0x8a   : > { %4988 = vmatmul.mubr.msk.f32.gmra.mrb[22].mxu1 %vm349_vm1, %v6382_v21  ;;  %5205 = vmatmul.mubr.msk.f32.vlgmr.msra.gmra.mrb[0].mxu0 %vm349_vm1, %v6205_v60  ;;  %v999_v60 = vld [vmem:[%s5884_s8 + $0x2] sm:$0xff] }
  0x8b   : > { %5253 = vmatpush3.msk.msra.mxu0 %vm446_vm0, %v6067_v34  ;;  %4990 = vmatprep.mubr.msk.f32.mxu1 %vm349_vm1, %v6385_v19  ;;  %v6419_v34 = vld [vmem:[%s5884_s8 + $0x140] sm:$0xff] }
  0x8c   : > { %5207 = vmatprep.mubr.msk.f32.mxu0 %vm349_vm1, %v6211_v62  ;;  %5302 = vmatprep.subr.msk.mxu0 %vm446_vm0, %v6390_v23  ;;  %v6422_v62 = vld [vmem:[%s5884_s8 + $0x150] sm:$0xff] }
  0x8e   : > { %4991 = vmatmul.mubr.msk.f32.gmra.mrb[24].mxu1 %vm349_vm1, %v6401_v20  ;;  %5208 = vmatmul.mubr.msk.f32.gmra.mrb[2].mxu0 %vm349_vm1, %v6225_v1  ;;  %v6433_v1 = vld [vmem:[%s5884_s8 + $0x158] sm:$0xff] }
  0x8f   : > { %4993 = vmatprep.mubr.msk.f32.mxu1 %vm349_vm1, %v6406_v58  ;;  %5210 = vmatprep.mubr.msk.f32.mxu0 %vm349_vm1, %v6231_v3  ;;  %v6436_v3 = vld [vmem:[%s5884_s8 + $0x168] sm:$0xff] }
  0x92   : > { %4994 = vmatmul.mubr.msk.f32.gmra.mrb[26].mxu1 %vm349_vm1, %v6419_v34  ;;  %5211 = vmatmul.mubr.msk.f32.gmra.mrb[4].mxu0 %vm349_vm1, %v6245_v5  ;;  %v6447_v5 = vld [vmem:[%s5884_s8 + $0x170] sm:$0xff] }
  0x93   : > { %4996 = vmatprep.mubr.msk.f32.mxu1 %vm349_vm1, %v6422_v62  ;;  %5213 = vmatprep.mubr.msk.f32.mxu0 %vm349_vm1, %v6251_v7 }
  0x96   : > { %4997 = vmatmul.mubr.msk.f32.gmra.mrb[28].mxu1 %vm349_vm1, %v6433_v1  ;;  %5214 = vmatmul.mubr.msk.f32.gmra.mrb[6].mxu0 %vm349_vm1, %v6265_v10  ;;  %v1000_v10 = vld [vmem:[%s5884_s8 + $0xa] sm:$0xff] }
  0x97   : > { %4999 = vmatprep.mubr.msk.f32.mxu1 %vm349_vm1, %v6436_v3  ;;  %5216 = vmatprep.mubr.msk.f32.mxu0 %vm349_vm1, %v6271_v51 }
  0x9a   : > { %5000 = vmatmul.mubr.msk.f32.gmra.mrb[30].mxu1 %vm349_vm1, %v6447_v5  ;;  %5217 = vmatmul.mubr.msk.f32.gmra.mrb[8].mxu0 %vm349_vm1, %v6285_v45 }
  0x9b   : > { %5004 = vmatprep.mubr.msk.f32.mxu1 %vm349_vm1, %v999_v60  ;;  %5219 = vmatprep.mubr.msk.f32.mxu0 %vm349_vm1, %v6291_v41  ;;  %v4421_v60 = vld [vmem:[%s5884_s8 + $0x1a0] sm:$0xff] }
  0x9e   : > { %5005 = vmatmul.mubr.msk.f32.vlgmr.msra.gmra.mrb[0].mxu1 %vm349_vm1, %v1000_v10  ;;  %5220 = vmatmul.mubr.msk.f32.gmra.mrb[10].mxu0 %vm349_vm1, %v6305_v37  ;;  %v7111_v10 = vld [vmem:[#allocation28_spill] sm:$0xff] }
  0x9f   : > { %5007 = vmatprep.mubr.msk.f32.mxu1 %vm349_vm1, %v6045_v30  ;;  %5222 = vmatprep.mubr.msk.f32.mxu0 %vm349_vm1, %v6311_v32  ;;  %v6526_v30 = vld [vmem:[%s5884_s8 + $0x180] sm:$0xff] }
  0xa0   : > { %5053 = vmatpush3.msk.msra.mxu1 %vm446_vm0, %v6174_v55  ;;  %v4420_v55 = vld [vmem:[%s5884_s8 + $0x198] sm:$0xff] }
  0xa1   : > { %5400 = vmatprep.subr.msk.mxu1 %vm446_vm0, %v5860_v0 }
  0xa2   : > { %5008 = vmatmul.mubr.msk.f32.gmra.mrb[2].mxu1 %vm349_vm1, %v6056_v31  ;;  %5223 = vmatmul.mubr.msk.f32.gmra.mrb[12].mxu0 %vm349_vm1, %v6325_v28  ;;  %v6537_v31 = vld [vmem:[%s5884_s8 + $0x188] sm:$0xff] }
  0xa3   : > { %5010 = vmatprep.mubr.msk.f32.mxu1 %vm349_vm1, %v6062_v33  ;;  %5225 = vmatprep.mubr.msk.f32.mxu0 %vm349_vm1, %v6331_v26 }
  0xa6   : > { %5011 = vmatmul.mubr.msk.f32.gmra.mrb[4].mxu1 %vm349_vm1, %v6081_v36  ;;  %5226 = vmatmul.mubr.msk.f32.gmra.mrb[14].mxu0 %vm349_vm1, %v6345_v24 }
  0xa7   : > { %5013 = vmatprep.mubr.msk.f32.mxu1 %vm349_vm1, %v6089_v38  ;;  %5228 = vmatprep.mubr.msk.f32.mxu0 %vm349_vm1, %v6351_v22 }
  0xaa   : > { %5014 = vmatmul.mubr.msk.f32.gmra.mrb[6].mxu1 %vm349_vm1, %v6105_v40  ;;  %5229 = vmatmul.mubr.msk.f32.gmra.mrb[16].mxu0 %vm349_vm1, %v6365_v56 }
  0xab   : > { %5016 = vmatprep.mubr.msk.f32.mxu1 %vm349_vm1, %v6111_v42  ;;  %5231 = vmatprep.mubr.msk.f32.mxu0 %vm349_vm1, %v6371_v53 }
  0xae   : > { %5017 = vmatmul.mubr.msk.f32.gmra.mrb[8].mxu1 %vm349_vm1, %v6125_v44  ;;  %5232 = vmatmul.mubr.msk.f32.gmra.mrb[18].mxu0 %vm349_vm1, %v6382_v21 }
  0xaf   : > { %5019 = vmatprep.mubr.msk.f32.mxu1 %vm349_vm1, %v6131_v46  ;;  %5234 = vmatprep.mubr.msk.f32.mxu0 %vm349_vm1, %v6385_v19 }
  0xb2   : > { %5020 = vmatmul.mubr.msk.f32.gmra.mrb[10].mxu1 %vm349_vm1, %v6145_v48  ;;  %5235 = vmatmul.mubr.msk.f32.gmra.mrb[20].mxu0 %vm349_vm1, %v6401_v20 }
  0xb3   : > { %5022 = vmatprep.mubr.msk.f32.mxu1 %vm349_vm1, %v6149_v50  ;;  %5237 = vmatprep.mubr.msk.f32.mxu0 %vm349_vm1, %v6406_v58 }
  0xb6   : > { %5023 = vmatmul.mubr.msk.f32.gmra.mrb[12].mxu1 %vm349_vm1, %v6160_v52  ;;  %5238 = vmatmul.mubr.msk.f32.gmra.mrb[22].mxu0 %vm349_vm1, %v6419_v34 }
  0xb7   : > { %5025 = vmatprep.mubr.msk.f32.mxu1 %vm349_vm1, %v6166_v54  ;;  %5240 = vmatprep.mubr.msk.f32.mxu0 %vm349_vm1, %v6422_v62 }
  0xba   : > { %5026 = vmatmul.mubr.msk.f32.gmra.mrb[14].mxu1 %vm349_vm1, %v6184_v57  ;;  %5241 = vmatmul.mubr.msk.f32.gmra.mrb[24].mxu0 %vm349_vm1, %v6433_v1 }
  0xbb   : > { %5028 = vmatprep.mubr.msk.f32.mxu1 %vm349_vm1, %v6190_v59  ;;  %5243 = vmatprep.mubr.msk.f32.mxu0 %vm349_vm1, %v6436_v3 }
  0xbe   : > { %5029 = vmatmul.mubr.msk.f32.gmra.mrb[16].mxu1 %vm349_vm1, %v6208_v61  ;;  %5244 = vmatmul.mubr.msk.f32.gmra.mrb[26].mxu0 %vm349_vm1, %v6447_v5 }
  0xbf   : > { %5031 = vmatprep.mubr.msk.f32.mxu1 %vm349_vm1, %v6214_v63  ;;  %5246 = vmatprep.mubr.msk.f32.mxu0 %vm349_vm1, %v6526_v30 }
  0xc2   : > { %5032 = vmatmul.mubr.msk.f32.gmra.mrb[18].mxu1 %vm349_vm1, %v6228_v2  ;;  %5247 = vmatmul.mubr.msk.f32.gmra.mrb[28].mxu0 %vm349_vm1, %v6537_v31 }
  0xc3   : > { %5034 = vmatprep.mubr.msk.f32.mxu1 %vm349_vm1, %v6234_v4  ;;  %5249 = vmatprep.mubr.msk.f32.mxu0 %vm349_vm1, %v4420_v55  ;;  %v7112_v55 = vld [vmem:[#allocation10_spill] sm:$0xff] }
  0xc6   : > { %5035 = vmatmul.mubr.msk.f32.gmra.mrb[20].mxu1 %vm349_vm1, %v6248_v6  ;;  %5250 = vmatmul.mubr.msk.f32.gmra.mrb[30].mxu0 %vm349_vm1, %v4421_v60  ;;  %v7113_v60 = vld [vmem:[#allocation29_spill] sm:$0xff] }
  0xc7   : > { %5037 = vmatprep.mubr.msk.f32.mxu1 %vm349_vm1, %v6254_v9  ;;  %5254 = vmatprep.mubr.msk.f32.mxu0 %vm349_vm1, %v5893_v8  ;;  %v7101_v8 = vld [vmem:[#allocation33_spill] sm:$0xff] }
  0xca   : > { %5038 = vmatmul.mubr.msk.f32.gmra.mrb[22].mxu1 %vm349_vm1, %v6268_v49  ;;  %5255 = vmatmul.mubr.msk.f32.vlgmr.msra.gmra.mrb[0].mxu0 %vm349_vm1, %v5910_v11  ;;  %v7102_v11 = vld [vmem:[#allocation5_spill] sm:$0xff] }
  0xcb   : > { %5303 = vmatpush3.msk.msra.mxu0 %vm446_vm0, %v6390_v23  ;;  %5040 = vmatprep.mubr.msk.f32.mxu1 %vm349_vm1, %v6274_v47  ;;  %v7110_v23 = vld [vmem:[#allocation9_spill] sm:$0xff] }
  0xcc   : > { %5257 = vmatprep.mubr.msk.f32.mxu0 %vm349_vm1, %v5915_v12  ;;  %v7103_v12 = vld [vmem:[#allocation24_spill] sm:$0xff] }
  0xce   : > { %5041 = vmatmul.mubr.msk.f32.gmra.mrb[24].mxu1 %vm349_vm1, %v6288_v43  ;;  %5258 = vmatmul.mubr.msk.f32.gmra.mrb[2].mxu0 %vm349_vm1, %v5930_v13  ;;  %v7104_v13 = vld [vmem:[#allocation6_spill] sm:$0xff] }
  0xcf   : > { %5043 = vmatprep.mubr.msk.f32.mxu1 %vm349_vm1, %v6294_v39  ;;  %5260 = vmatprep.mubr.msk.f32.mxu0 %vm349_vm1, %v5933_v14  ;;  %v7105_v14 = vld [vmem:[#allocation25_spill] sm:$0xff] }
  0xd2   : > { %5044 = vmatmul.mubr.msk.f32.gmra.mrb[26].mxu1 %vm349_vm1, %v6308_v35  ;;  %5261 = vmatmul.mubr.msk.f32.gmra.mrb[4].mxu0 %vm349_vm1, %v5944_v15  ;;  %v7106_v15 = vld [vmem:[#allocation7_spill] sm:$0xff] }
  0xd3   : > { %5046 = vmatprep.mubr.msk.f32.mxu1 %vm349_vm1, %v6314_v29  ;;  %5263 = vmatprep.mubr.msk.f32.mxu0 %vm349_vm1, %v5947_v16  ;;  %v7107_v16 = vld [vmem:[#allocation26_spill] sm:$0xff] }
  0xd6   : > { %5047 = vmatmul.mubr.msk.f32.gmra.mrb[28].mxu1 %vm349_vm1, %v6328_v27  ;;  %5264 = vmatmul.mubr.msk.f32.gmra.mrb[6].mxu0 %vm349_vm1, %v5958_v17  ;;  %v7108_v17 = vld [vmem:[#allocation8_spill] sm:$0xff] }
  0xd7   : > { %5049 = vmatprep.mubr.msk.f32.mxu1 %vm349_vm1, %v6334_v25  ;;  %5266 = vmatprep.mubr.msk.f32.mxu0 %vm349_vm1, %v5961_v18  ;;  %v7109_v18 = vld [vmem:[#allocation27_spill] sm:$0xff] }
  0xda   : > { %5050 = vmatmul.mubr.msk.f32.gmra.mrb[30].mxu1 %vm349_vm1, %v7101_v8  ;;  %5267 = vmatmul.mubr.msk.f32.gmra.mrb[8].mxu0 %vm349_vm1, %v7102_v11  ;;  %v7114_v11 = vld [vmem:[#allocation11_spill] sm:$0xff] }
  0xdb   : > { %5054 = vmatprep.mubr.msk.f32.mxu1 %vm349_vm1, %v7103_v12  ;;  %5269 = vmatprep.mubr.msk.f32.mxu0 %vm349_vm1, %v7104_v13  ;;  %v7115_v12 = vld [vmem:[#allocation30_spill] sm:$0xff]  ;;  %v7117_v13 = vld [vmem:[#allocation31_spill] sm:$0xff] }
  0xde   : > { %5055 = vmatmul.mubr.msk.f32.vlgmr.msra.gmra.mrb[0].mxu1 %vm349_vm1, %v7105_v14  ;;  %5270 = vmatmul.mubr.msk.f32.gmra.mrb[10].mxu0 %vm349_vm1, %v7106_v15  ;;  %v7118_v14 = vld [vmem:[#allocation13_spill] sm:$0xff]  ;;  %v7119_v15 = vld [vmem:[#allocation14_spill] sm:$0xff] }
  0xdf   : > { %5057 = vmatprep.mubr.msk.f32.mxu1 %vm349_vm1, %v7107_v16  ;;  %5272 = vmatprep.mubr.msk.f32.mxu0 %vm349_vm1, %v7108_v17  ;;  %v7120_v16 = vld [vmem:[#allocation32_spill] sm:$0xff]  ;;  %v7121_v17 = vld [vmem:[#allocation15_spill] sm:$0xff] }
  0xe0   : > { %5401 = vmatpush3.msk.msra.mxu1 %vm446_vm0, %v5860_v0  ;;  %v7116_v0 = vld [vmem:[#allocation12_spill] sm:$0xff] }
  0xe2   : > { %5058 = vmatmul.mubr.msk.f32.gmra.mrb[2].mxu1 %vm349_vm1, %v7109_v18  ;;  %5273 = vmatmul.mubr.msk.f32.gmra.mrb[12].mxu0 %vm349_vm1, %v7110_v23  ;;  %v7122_v18 = vld [vmem:[#allocation16_spill] sm:$0xff]  ;;  %v7124_v23 = vld [vmem:[#allocation18_spill] sm:$0xff] }
  0xe3   : > { %5060 = vmatprep.mubr.msk.f32.mxu1 %vm349_vm1, %v7111_v10  ;;  %5275 = vmatprep.mubr.msk.f32.mxu0 %vm349_vm1, %v7112_v55  ;;  %v4483_v10 = vld [vmem:[%s5884_s8 + $0x181] sm:$0xff]  ;;  %v4485_v55 = vld [vmem:[%s5884_s8 + $0x199] sm:$0xff] }
  0xe6   : > { %5061 = vmatmul.mubr.msk.f32.gmra.mrb[4].mxu1 %vm349_vm1, %v7113_v60  ;;  %5276 = vmatmul.mubr.msk.f32.gmra.mrb[14].mxu0 %vm349_vm1, %v7114_v11 }
  0xe7   : > { %5063 = vmatprep.mubr.msk.f32.mxu1 %vm349_vm1, %v7115_v12  ;;  %5278 = vmatprep.mubr.msk.f32.mxu0 %vm349_vm1, %v7116_v0 }
  0xea   : > { %5064 = vmatmul.mubr.msk.f32.gmra.mrb[6].mxu1 %vm349_vm1, %v7117_v13  ;;  %5279 = vmatmul.mubr.msk.f32.gmra.mrb[16].mxu0 %vm349_vm1, %v7118_v14 }
  0xeb   : > { %5066 = vmatprep.mubr.msk.f32.mxu1 %vm349_vm1, %v6251_v7  ;;  %5281 = vmatprep.mubr.msk.f32.mxu0 %vm349_vm1, %v7119_v15  ;;  %v7123_v7 = vld [vmem:[#allocation17_spill] sm:$0xff] }
  0xee   : > { %5067 = vmatmul.mubr.msk.f32.gmra.mrb[8].mxu1 %vm349_vm1, %v7120_v16  ;;  %5282 = vmatmul.mubr.msk.f32.gmra.mrb[18].mxu0 %vm349_vm1, %v7121_v17 }
  0xef   : > { %5069 = vmatprep.mubr.msk.f32.mxu1 %vm349_vm1, %v6271_v51  ;;  %5284 = vmatprep.mubr.msk.f32.mxu0 %vm349_vm1, %v7122_v18  ;;  %v7125_v51 = vld [vmem:[#allocation19_spill] sm:$0xff] }
  0xf2   : > { %5070 = vmatmul.mubr.msk.f32.gmra.mrb[10].mxu1 %vm349_vm1, %v6285_v45  ;;  %5285 = vmatmul.mubr.msk.f32.gmra.mrb[20].mxu0 %vm349_vm1, %v7123_v7  ;;  %v7126_v45 = vld [vmem:[#allocation20_spill] sm:$0xff] }
  0xf3   : > { %5072 = vmatprep.mubr.msk.f32.mxu1 %vm349_vm1, %v6291_v41  ;;  %5287 = vmatprep.mubr.msk.f32.mxu0 %vm349_vm1, %v7124_v23  ;;  %v7127_v41 = vld [vmem:[#allocation21_spill] sm:$0xff] }
  0xf6   : > { %5073 = vmatmul.mubr.msk.f32.gmra.mrb[12].mxu1 %vm349_vm1, %v6305_v37  ;;  %5288 = vmatmul.mubr.msk.f32.gmra.mrb[22].mxu0 %vm349_vm1, %v7125_v51  ;;  %v7128_v37 = vld [vmem:[#allocation22_spill] sm:$0xff] }
  0xf7   : > { %5075 = vmatprep.mubr.msk.f32.mxu1 %vm349_vm1, %v6311_v32  ;;  %5290 = vmatprep.mubr.msk.f32.mxu0 %vm349_vm1, %v7126_v45  ;;  %v7129_v32 = vld [vmem:[#allocation23_spill] sm:$0xff] }
  0xfa   : > { %5076 = vmatmul.mubr.msk.f32.gmra.mrb[14].mxu1 %vm349_vm1, %v6325_v28  ;;  %5291 = vmatmul.mubr.msk.f32.gmra.mrb[24].mxu0 %vm349_vm1, %v7127_v41  ;;  %v4484_v28 = vld [vmem:[%s5884_s8 + $0x189] sm:$0xff] }
  0xfb   : > { %5078 = vmatprep.mubr.msk.f32.mxu1 %vm349_vm1, %v6331_v26  ;;  %5293 = vmatprep.mubr.msk.f32.mxu0 %vm349_vm1, %v7128_v37  ;;  %v3859_v26 = vld [vmem:[%s7023_s3] sm:$0xff] }
  0xfe   : > { %5079 = vmatmul.mubr.msk.f32.gmra.mrb[16].mxu1 %vm349_vm1, %v6345_v24  ;;  %5294 = vmatmul.mubr.msk.f32.gmra.mrb[26].mxu0 %vm349_vm1, %v7129_v32  ;;  %v4486_v24 = vld [vmem:[%s5884_s8 + $0x1a1] sm:$0xff] }
  0xff   : > { %5081 = vmatprep.mubr.msk.f32.mxu1 %vm349_vm1, %v6351_v22  ;;  %5296 = vmatprep.mubr.msk.f32.mxu0 %vm349_vm1, %v4483_v10  ;;  %v4551_v22 = vld [vmem:[%s5884_s8 + $0x1a2] sm:$0xff] }
 0x102   : > { %5082 = vmatmul.mubr.msk.f32.gmra.mrb[18].mxu1 %vm349_vm1, %v6365_v56  ;;  %5297 = vmatmul.mubr.msk.f32.gmra.mrb[28].mxu0 %vm349_vm1, %v4484_v28 }
 0x103   : > { %5084 = vmatprep.mubr.msk.f32.mxu1 %vm349_vm1, %v6371_v53  ;;  %5299 = vmatprep.mubr.msk.f32.mxu0 %vm349_vm1, %v4485_v55 }
 0x106   : > { %5085 = vmatmul.mubr.msk.f32.gmra.mrb[20].mxu1 %vm349_vm1, %v6382_v21  ;;  %5300 = vmatmul.mubr.msk.f32.gmra.mrb[30].mxu0 %vm349_vm1, %v4486_v24  ;;  %v7131_v21 = vld [vmem:[#allocation35_spill] sm:$0xff] }
 0x107   : > { %5087 = vmatprep.mubr.msk.f32.mxu1 %vm349_vm1, %v6385_v19  ;;  %5304 = vmatprep.mubr.msk.f32.mxu0 %vm349_vm1, %v6062_v33  ;;  %v7130_v19 = vld [vmem:[#allocation34_spill] sm:$0xff] }
 0x108   : > { %v3861_v33 = vld [vmem:[%s7023_s3 + $0x10] sm:$0xff] }
 0x10a   : > { %5088 = vmatmul.mubr.msk.f32.gmra.mrb[22].mxu1 %vm349_vm1, %v6401_v20  ;;  %5305 = vmatmul.mubr.msk.f32.vlgmr.msra.gmra.mrb[0].mxu0 %vm349_vm1, %v6081_v36  ;;  %v4550_v20 = vld [vmem:[%s5884_s8 + $0x19a] sm:$0xff] }
 0x10b   : > { %5090 = vmatprep.mubr.msk.f32.mxu1 %vm349_vm1, %v6406_v58  ;;  %5307 = vmatprep.mubr.msk.f32.mxu0 %vm349_vm1, %v6089_v38 }
 0x10e   : > { %5091 = vmatmul.mubr.msk.f32.gmra.mrb[24].mxu1 %vm349_vm1, %v6419_v34  ;;  %5308 = vmatmul.mubr.msk.f32.gmra.mrb[2].mxu0 %vm349_vm1, %v6105_v40  ;;  %v5767_v40 = vmov 0.0  }
 0x10f   : > { %5093 = vmatprep.mubr.msk.f32.mxu1 %vm349_vm1, %v6422_v62  ;;  %5310 = vmatprep.mubr.msk.f32.mxu0 %vm349_vm1, %v6111_v42 }
 0x112   : > { %5094 = vmatmul.mubr.msk.f32.gmra.mrb[26].mxu1 %vm349_vm1, %v6433_v1  ;;  %5311 = vmatmul.mubr.msk.f32.gmra.mrb[4].mxu0 %vm349_vm1, %v6125_v44 }
 0x113   : > { %5096 = vmatprep.mubr.msk.f32.mxu1 %vm349_vm1, %v6436_v3  ;;  %5313 = vmatprep.mubr.msk.f32.mxu0 %vm349_vm1, %v6131_v46 }
 0x116   : > { %5097 = vmatmul.mubr.msk.f32.gmra.mrb[28].mxu1 %vm349_vm1, %v6447_v5  ;;  %5314 = vmatmul.mubr.msk.f32.gmra.mrb[6].mxu0 %vm349_vm1, %v6145_v48  ;;  %v6829_v5 = vld [vmem:[%s7022_s2] ss:$0 sm:$0xff] }
 0x117   : > { %5099 = vmatprep.mubr.msk.f32.mxu1 %vm349_vm1, %v6526_v30  ;;  %5316 = vmatprep.mubr.msk.f32.mxu0 %vm349_vm1, %v6149_v50 }
 0x11a   : > { %5100 = vmatmul.mubr.msk.f32.gmra.mrb[30].mxu1 %vm349_vm1, %v6537_v31  ;;  %5317 = vmatmul.mubr.msk.f32.gmra.mrb[8].mxu0 %vm349_vm1, %v6160_v52 }
 0x11b   : > { %5137 = vmatprep.mubr.msk.f32.mxu1 %vm349_vm1, %v7122_v18  ;;  %5319 = vmatprep.mubr.msk.f32.mxu0 %vm349_vm1, %v6166_v54 }
 0x11e   : > { %5138 = vmatmul.mubr.msk.f32.vlgmr.msra.gmra.mrb[22].mxu1 %vm349_vm1, %v7123_v7  ;;  %5320 = vmatmul.mubr.msk.f32.gmra.mrb[10].mxu0 %vm349_vm1, %v6184_v57 }
 0x11f   : > { %5140 = vmatprep.mubr.msk.f32.mxu1 %vm349_vm1, %v7124_v23  ;;  %5322 = vmatprep.mubr.msk.f32.mxu0 %vm349_vm1, %v6190_v59 }
 0x122   : > { %5141 = vmatmul.mubr.msk.f32.gmra.mrb[24].mxu1 %vm349_vm1, %v7125_v51  ;;  %5323 = vmatmul.mubr.msk.f32.gmra.mrb[12].mxu0 %vm349_vm1, %v6208_v61 }
 0x123   : > { %5143 = vmatprep.mubr.msk.f32.mxu1 %vm349_vm1, %v7126_v45  ;;  %5325 = vmatprep.mubr.msk.f32.mxu0 %vm349_vm1, %v6214_v63 }
 0x126   : > { %5144 = vmatmul.mubr.msk.f32.gmra.mrb[26].mxu1 %vm349_vm1, %v7127_v41  ;;  %5326 = vmatmul.mubr.msk.f32.gmra.mrb[14].mxu0 %vm349_vm1, %v6228_v2 }
 0x127   : > { %5146 = vmatprep.mubr.msk.f32.mxu1 %vm349_vm1, %v7128_v37  ;;  %5328 = vmatprep.mubr.msk.f32.mxu0 %vm349_vm1, %v6234_v4 }
 0x12a   : > { %5147 = vmatmul.mubr.msk.f32.gmra.mrb[28].mxu1 %vm349_vm1, %v7129_v32  ;;  %5329 = vmatmul.mubr.msk.f32.gmra.mrb[16].mxu0 %vm349_vm1, %v6248_v6 }
 0x12b   : > { %5149 = vmatprep.mubr.msk.f32.mxu1 %vm349_vm1, %v4483_v10  ;;  %5331 = vmatprep.mubr.msk.f32.mxu0 %vm349_vm1, %v6254_v9 }
 0x12e   : > { %5150 = vmatmul.mubr.msk.f32.gmra.mrb[30].mxu1 %vm349_vm1, %v4484_v28  ;;  %5332 = vmatmul.mubr.msk.f32.gmra.mrb[18].mxu0 %vm349_vm1, %v6268_v49 }
 0x12f   : > { %5334 = vmatprep.mubr.msk.f32.mxu0 %vm349_vm1, %v6274_v47  ;;  %5360 = vmatprep.mubr.msk.f32.mxu1 %vm5766_vm2, %v5767_v40 }
 0x132   : > { %5335 = vmatmul.mubr.msk.f32.gmra.mrb[20].mxu0 %vm349_vm1, %v6288_v43 }
 0x133   : > { %5337 = vmatprep.mubr.msk.f32.mxu0 %vm349_vm1, %v6294_v39 }
 0x136   : > { %5338 = vmatmul.mubr.msk.f32.gmra.mrb[22].mxu0 %vm349_vm1, %v6308_v35  ;;  %v3862_v35 = vld [vmem:[%s7023_s3 + $0x18] sm:$0xff] }
 0x137   : > { %5340 = vmatprep.mubr.msk.f32.mxu0 %vm349_vm1, %v6314_v29  ;;  %v5765_v29 = vmov 0.0|0.0   ;;  %v5386_v36 = vpack.c.bf16 %v3862_v35, %v3861_v33 }
 0x138   : > { %5382 = vmatprep.subr.bf16.mxu1 %v5765_v29 }
 0x13a   : > { %5341 = vmatmul.mubr.msk.f32.gmra.mrb[24].mxu0 %vm349_vm1, %v6328_v27 }
 0x13b   : > { %5343 = vmatprep.mubr.msk.f32.mxu0 %vm349_vm1, %v6334_v25  ;;  %v3860_v25 = vld [vmem:[%s7023_s3 + $0x8] sm:$0xff] }
 0x13c   : > { %v5383_v27 = vpack.c.bf16 %v3860_v25, %v3859_v26 }
 0x13e   : > { %5344 = vmatmul.mubr.msk.f32.gmra.mrb[26].mxu0 %vm349_vm1, %v7101_v8  ;;  %5384 = vmatpush3.bf16.msra.mxu1 %v5383_v27 }
 0x13f   : > { %5346 = vmatprep.mubr.msk.f32.mxu0 %vm349_vm1, %v7130_v19  ;;  %5385 = vmatprep.subr.bf16.mxu1 %v5765_v29 }
 0x142   : > { %5347 = vmatmul.mubr.msk.f32.gmra.mrb[28].mxu0 %vm349_vm1, %v7131_v21  ;;  %5387 = vmatpush3.bf16.msra.mxu1 %v5386_v36 }
 0x143   : > { %5349 = vmatprep.mubr.msk.f32.mxu0 %vm349_vm1, %v4550_v20  ;;  %5388 = vmatprep.subr.bf16.mxu1 %v5765_v29 }
 0x146   : > { %5350 = vmatmul.mubr.msk.f32.gmra.mrb[30].mxu0 %vm349_vm1, %v4551_v22 }
 0x1b1   : > { %v5056_v38 = vpop.f32.mrb[0].mxu1 }
 0x1b2   : > { %v1585_v39 = vpop.f32.mrb[1].mxu1 }
 0x1b5   : > { %v5059_v42 = vpop.f32.mrb[2].mxu1 }
 0x1b6   : > { %v1595_v43 = vpop.f32.mrb[3].mxu1 }
 0x1b9   : > { %v5062_v44 = vpop.f32.mrb[4].mxu1 }
 0x1ba   : > { %v1605_v46 = vpop.f32.mrb[5].mxu1 }
 0x1bd   : > { %v5065_v47 = vpop.f32.mrb[6].mxu1 }
 0x1be   : > { %v1615_v48 = vpop.f32.mrb[7].mxu1 }
 0x1c1   : > { %v5068_v50 = vpop.f32.mrb[8].mxu1 }
 0x1c2   : > { %v1625_v52 = vpop.f32.mrb[9].mxu1 }
 0x1c5   : > { %v6802_v53 = vpop.f32.mrb[10].mxu1 }
 0x1c6   : > { %v6804_v54 = vpop.f32.mrb[11].mxu1 }
 0x1c9   : > { %v6806_v56 = vpop.f32.mrb[12].mxu1 }
 0x1ca   : > { %v6808_v57 = vpop.f32.mrb[13].mxu1 }
 0x1cd   : > { %v6810_v58 = vpop.f32.mrb[14].mxu1 }
 0x1ce   : > { %v6812_v59 = vpop.f32.mrb[15].mxu1 }
 0x1d1   : > { %v6814_v61 = vpop.f32.mrb[16].mxu1 }
 0x1d2   : > { %v6816_v62 = vpop.f32.mrb[17].mxu1 }
 0x1d5   : > { %v6818_v63 = vpop.f32.mrb[18].mxu1 }
 0x1d6   : > { %v6820_v1 = vpop.f32.mrb[19].mxu1 }
 0x1d9   : > { %v6822_v2 = vpop.f32.mrb[20].mxu1 }
 0x1da   : > { %v6824_v3 = vpop.f32.mrb[21].mxu1 }
 0x1dd   : > { %v5306_v4 = vpop.f32.mrb[0].mxu0 }
 0x1de   : > { %v5402_v6 = vadd.f32 %v5306_v4, %v5056_v38  ;;  %v3526_v9 = vpop.f32.mrb[1].mxu0 }
 0x1df   : > { %v5403_v49 = vadd.f32 %v3526_v9, %v1585_v39 }
 0x1e0   : > { %v3725_v34 = vadd.f32 %v5402_v6, %v6829_v5 }
 0x1e1   : > { %v3724_v30 = vadd.f32 %v5403_v49, %v6829_v5  ;;  %v5309_v31 = vpop.f32.mrb[2].mxu0 }
 0x1e2   : > { %v3757_v8 = vmax.f32 %v3725_v34, 0.0  ;;  %v5404_v60 = vadd.f32 %v5309_v31, %v5059_v42  ;;  %v3536_v11 = vpop.f32.mrb[3].mxu0 }
 0x1e3   : > { %v3756_v12 = vmax.f32 %v3724_v30, 0.0  ;;  %v5405_v0 = vadd.f32 %v3536_v11, %v1595_v43 }
 0x1e4   : > { %v3790_v13 = vsel %vm3788_vm3, %v3757_v8, 0.0  ;;  %v3727_v14 = vadd.f32 %v5404_v60, %v6829_v5 }
 0x1e5   : > { %v3789_v15 = vsel %vm3788_vm3, %v3756_v12, 0.0  ;;  %v3726_v16 = vadd.f32 %v5405_v0, %v6829_v5  ;;  %v5312_v17 = vpop.f32.mrb[4].mxu0 }
 0x1e6   : > { %v3791_v18 = vadd.f32 %v3790_v13, %v3789_v15  ;;  %v5406_v7 = vadd.f32 %v5312_v17, %v5062_v44  ;;  %v3546_v23 = vpop.f32.mrb[5].mxu0  ;;  %v3759_v51 = vmax.f32 %v3727_v14, 0.0 }
 0x1e7   : > { %v3758_v45 = vmax.f32 %v3726_v16, 0.0  ;;  %v5407_v41 = vadd.f32 %v3546_v23, %v1605_v46 }
 0x1e8   : > { %v3729_v37 = vadd.f32 %v5406_v7, %v6829_v5  ;;  %v3794_v20 = vsel %vm3788_vm3, %v3759_v51, 0.0 }
 0x1e9   : > { %v3792_v10 = vsel %vm3788_vm3, %v3758_v45, 0.0  ;;  %v3728_v32 = vadd.f32 %v5407_v41, %v6829_v5  ;;  %v5315_v28 = vpop.f32.mrb[6].mxu0 }
 0x1ea   : > { %v3793_v55 = vadd.f32 %v3792_v10, %v3791_v18  ;;  %v5408_v24 = vadd.f32 %v5315_v28, %v5065_v47  ;;  %v3556_v19 = vpop.f32.mrb[7].mxu0  ;;  %v3761_v21 = vmax.f32 %v3729_v37, 0.0 }
 0x1eb   : > { %v3760_v22 = vmax.f32 %v3728_v32, 0.0  ;;  %v5409_v26 = vadd.f32 %v3556_v19, %v1615_v48 }
 0x1ec   : > { %v3795_v25 = vadd.f32 %v3794_v20, %v3793_v55  ;;  %v3731_v27 = vadd.f32 %v5408_v24, %v6829_v5  ;;  %v3798_v43 = vsel %vm3788_vm3, %v3761_v21, 0.0 }
 0x1ed   : > { %v3796_v33 = vsel %vm3788_vm3, %v3760_v22, 0.0  ;;  %v3730_v35 = vadd.f32 %v5409_v26, %v6829_v5  ;;  %v5318_v36 = vpop.f32.mrb[8].mxu0 }
 0x1ee   : > { %v3797_v38 = vadd.f32 %v3796_v33, %v3795_v25  ;;  %v5410_v39 = vadd.f32 %v5318_v36, %v5068_v50  ;;  %v3566_v42 = vpop.f32.mrb[9].mxu0  ;;  %v3763_v44 = vmax.f32 %v3731_v27, 0.0 }
 0x1ef   : > { %v3762_v46 = vmax.f32 %v3730_v35, 0.0  ;;  %v5411_v47 = vadd.f32 %v3566_v42, %v1625_v52 }
 0x1f0   : > { %v3799_v4 = vadd.f32 %v3798_v43, %v3797_v38  ;;  %v3733_v6 = vadd.f32 %v5410_v39, %v6829_v5  ;;  %v3802_v60 = vsel %vm3788_vm3, %v3763_v44, 0.0 }
 0x1f1   : > { %v3800_v48 = vsel %vm3788_vm3, %v3762_v46, 0.0  ;;  %v3732_v9 = vadd.f32 %v5411_v47, %v6829_v5  ;;  %v6848_v49 = vpop.f32.mrb[22].mxu1  ;;  %v5321_v34 = vpop.f32.mrb[10].mxu0 }
 0x1f2   : > { %v3801_v30 = vadd.f32 %v3800_v48, %v3799_v4  ;;  %v5412_v31 = vadd.f32 %v5321_v34, %v6802_v53  ;;  %v6851_v50 = vpop.f32.mrb[23].mxu1  ;;  %v3576_v8 = vpop.f32.mrb[11].mxu0  ;;  %v3765_v11 = vmax.f32 %v3733_v6, 0.0 }
 0x1f3   : > { %v3764_v52 = vmax.f32 %v3732_v9, 0.0  ;;  %v5413_v12 = vadd.f32 %v3576_v8, %v6804_v54 }
 0x1f4   : > { %v3803_v0 = vadd.f32 %v3802_v60, %v3801_v30  ;;  %v3735_v13 = vadd.f32 %v5412_v31, %v6829_v5  ;;  %v3806_v51 = vsel %vm3788_vm3, %v3765_v11, 0.0 }
 0x1f5   : > { %v3804_v14 = vsel %vm3788_vm3, %v3764_v52, 0.0  ;;  %v3734_v15 = vadd.f32 %v5413_v12, %v6829_v5  ;;  %v6858_v16 = vpop.f32.mrb[24].mxu1  ;;  %v5324_v17 = vpop.f32.mrb[12].mxu0 }
 0x1f6   : > { %v3805_v53 = vadd.f32 %v3804_v14, %v3803_v0  ;;  %v5414_v18 = vadd.f32 %v5324_v17, %v6806_v56  ;;  %v6861_v7 = vpop.f32.mrb[25].mxu1  ;;  %v3586_v23 = vpop.f32.mrb[13].mxu0  ;;  %v3767_v45 = vmax.f32 %v3735_v13, 0.0 }
 0x1f7   : > { %v3766_v54 = vmax.f32 %v3734_v15, 0.0  ;;  %v5415_v41 = vadd.f32 %v3586_v23, %v6808_v57 }
 0x1f8   : > { %v3807_v37 = vadd.f32 %v3806_v51, %v3805_v53  ;;  %v3737_v10 = vadd.f32 %v5414_v18, %v6829_v5  ;;  %v3810_v22 = vsel %vm3788_vm3, %v3767_v45, 0.0 }
 0x1f9   : > { %v3808_v32 = vsel %vm3788_vm3, %v3766_v54, 0.0  ;;  %v3736_v28 = vadd.f32 %v5415_v41, %v6829_v5  ;;  %v6868_v55 = vpop.f32.mrb[26].mxu1  ;;  %v5327_v24 = vpop.f32.mrb[14].mxu0 }
 0x1fa   : > { %v3809_v56 = vadd.f32 %v3808_v32, %v3807_v37  ;;  %v5416_v19 = vadd.f32 %v5327_v24, %v6810_v58  ;;  %v6871_v20 = vpop.f32.mrb[27].mxu1  ;;  %v3596_v21 = vpop.f32.mrb[15].mxu0  ;;  %v3769_v26 = vmax.f32 %v3737_v10, 0.0 }
 0x1fb   : > { %v3768_v57 = vmax.f32 %v3736_v28, 0.0  ;;  %v5417_v25 = vadd.f32 %v3596_v21, %v6812_v59 }
 0x1fc   : > { %v3811_v27 = vadd.f32 %v3810_v22, %v3809_v56  ;;  %v3739_v33 = vadd.f32 %v5416_v19, %v6829_v5  ;;  %v3814_v46 = vsel %vm3788_vm3, %v3769_v26, 0.0 }
 0x1fd   : > { %v3812_v35 = vsel %vm3788_vm3, %v3768_v57, 0.0  ;;  %v3738_v36 = vadd.f32 %v5417_v25, %v6829_v5  ;;  %v6878_v38 = vpop.f32.mrb[28].mxu1  ;;  %v5330_v39 = vpop.f32.mrb[16].mxu0 }
 0x1fe   : > { %v3813_v58 = vadd.f32 %v3812_v35, %v3811_v27  ;;  %v5418_v42 = vadd.f32 %v5330_v39, %v6814_v61  ;;  %v6881_v43 = vpop.f32.mrb[29].mxu1  ;;  %v3606_v44 = vpop.f32.mrb[17].mxu0  ;;  %v3771_v47 = vmax.f32 %v3739_v33, 0.0 }
 0x1ff   : > { %v3770_v59 = vmax.f32 %v3738_v36, 0.0  ;;  %v5419_v4 = vadd.f32 %v3606_v44, %v6816_v62 }
 0x200   : > { %v3815_v6 = vadd.f32 %v3814_v46, %v3813_v58  ;;  %v3741_v48 = vadd.f32 %v5418_v42, %v6829_v5  ;;  %v3818_v52 = vsel %vm3788_vm3, %v3771_v47, 0.0 }
 0x201   : > { %v3816_v9 = vsel %vm3788_vm3, %v3770_v59, 0.0  ;;  %v3740_v34 = vadd.f32 %v5419_v4, %v6829_v5  ;;  %v6888_v30 = vpop.f32.mrb[30].mxu1  ;;  %v5333_v31 = vpop.f32.mrb[18].mxu0 }
 0x202   : > { %v3817_v61 = vadd.f32 %v3816_v9, %v3815_v6  ;;  %v5420_v8 = vadd.f32 %v5333_v31, %v6818_v63  ;;  %v6891_v60 = vpop.f32.mrb[31].mxu1  ;;  %v3616_v11 = vpop.f32.mrb[19].mxu0  ;;  %v3773_v12 = vmax.f32 %v3741_v48, 0.0 }
 0x203   : > { %v3772_v62 = vmax.f32 %v3740_v34, 0.0  ;;  %v5421_v0 = vadd.f32 %v3616_v11, %v6820_v1 }
 0x204   : > { %v3819_v13 = vadd.f32 %v3818_v52, %v3817_v61  ;;  %v3743_v14 = vadd.f32 %v5420_v8, %v6829_v5  ;;  %v3822_v51 = vsel %vm3788_vm3, %v3773_v12, 0.0 }
 0x205   : > { %v3820_v15 = vsel %vm3788_vm3, %v3772_v62, 0.0  ;;  %v3742_v17 = vadd.f32 %v5421_v0, %v6829_v5  ;;  %v5336_v53 = vpop.f32.mrb[20].mxu0 }
 0x206   : > { %v3821_v18 = vadd.f32 %v3820_v15, %v3819_v13  ;;  %v5422_v63 = vadd.f32 %v5336_v53, %v6822_v2  ;;  %v3626_v23 = vpop.f32.mrb[21].mxu0  ;;  %v3775_v45 = vmax.f32 %v3743_v14, 0.0 }
 0x207   : > { %v3774_v54 = vmax.f32 %v3742_v17, 0.0  ;;  %v5423_v41 = vadd.f32 %v3626_v23, %v6824_v3 }
 0x208   : > { %v3823_v37 = vadd.f32 %v3822_v51, %v3821_v18  ;;  %v3745_v1 = vadd.f32 %v5422_v63, %v6829_v5  ;;  %v3826_v2 = vsel %vm3788_vm3, %v3775_v45, 0.0 }
 0x209   : > { %v3824_v10 = vsel %vm3788_vm3, %v3774_v54, 0.0  ;;  %v3744_v32 = vadd.f32 %v5423_v41, %v6829_v5  ;;  %v5339_v28 = vpop.f32.mrb[22].mxu0 }
 0x20a   : > { %v3825_v24 = vadd.f32 %v3824_v10, %v3823_v37  ;;  %v5424_v56 = vadd.f32 %v5339_v28, %v6848_v49  ;;  %v3636_v19 = vpop.f32.mrb[23].mxu0  ;;  %v3777_v21 = vmax.f32 %v3745_v1, 0.0 }
 0x20b   : > { %v3776_v22 = vmax.f32 %v3744_v32, 0.0  ;;  %v5425_v26 = vadd.f32 %v3636_v19, %v6851_v50 }
 0x20c   : > { %v3827_v57 = vadd.f32 %v3826_v2, %v3825_v24  ;;  %v3747_v3 = vadd.f32 %v5424_v56, %v6829_v5  ;;  %v3830_v49 = vsel %vm3788_vm3, %v3777_v21, 0.0 }
 0x20d   : > { %v3828_v25 = vsel %vm3788_vm3, %v3776_v22, 0.0  ;;  %v3746_v27 = vadd.f32 %v5425_v26, %v6829_v5  ;;  %v5342_v33 = vpop.f32.mrb[24].mxu0 }
 0x20e   : > { %v3829_v35 = vadd.f32 %v3828_v25, %v3827_v57  ;;  %v5426_v36 = vadd.f32 %v5342_v33, %v6858_v16  ;;  %v3646_v39 = vpop.f32.mrb[25].mxu0  ;;  %v3779_v58 = vmax.f32 %v3747_v3, 0.0 }
 0x20f   : > { %v3778_v42 = vmax.f32 %v3746_v27, 0.0  ;;  %v5427_v44 = vadd.f32 %v3646_v39, %v6861_v7 }
 0x210   : > { %v3831_v46 = vadd.f32 %v3830_v49, %v3829_v35  ;;  %v3749_v50 = vadd.f32 %v5426_v36, %v6829_v5  ;;  %v3834_v16 = vsel %vm3788_vm3, %v3779_v58, 0.0  ;;  %v3939_v35 = vld [vmem:[%s7025_s5 + $0x8] sm:$0xff]  ;;  %v3940_v58 = vld [vmem:[%s7025_s5 + $0x10] sm:$0xff] }
 0x211   : > { %v3832_v47 = vsel %vm3788_vm3, %v3778_v42, 0.0  ;;  %v3748_v59 = vadd.f32 %v5427_v44, %v6829_v5  ;;  %v5345_v4 = vpop.f32.mrb[26].mxu0  ;;  %v3941_v42 = vld [vmem:[%s7025_s5 + $0x18] sm:$0xff] }
 0x212   : > { %v3833_v6 = vadd.f32 %v3832_v47, %v3831_v46  ;;  %v5428_v48 = vadd.f32 %v5345_v4, %v6868_v55  ;;  %v3656_v9 = vpop.f32.mrb[27].mxu0  ;;  %v3781_v34 = vmax.f32 %v3749_v50, 0.0  ;;  %v5392_v44 = vpack.c.bf16 %v3941_v42, %v3940_v58  ;;  %v3942_v46 = vld [vmem:[%s7025_s5 + $0x20] sm:$0xff]  ;;  %v3943_v50 = vld [vmem:[%s7025_s5 + $0x28] sm:$0xff] }
 0x213   : > { %v3780_v31 = vmax.f32 %v3748_v59, 0.0  ;;  %v5429_v61 = vadd.f32 %v3656_v9, %v6871_v20  ;;  %v5395_v47 = vpack.c.bf16 %v3943_v50, %v3942_v46  ;;  %v3945_v59 = vld [vmem:[%s7025_s5 + $0x38] sm:$0xff] }
 0x214   : > { %v3835_v8 = vadd.f32 %v3834_v16, %v3833_v6  ;;  %v3751_v7 = vadd.f32 %v5428_v48, %v6829_v5  ;;  %v3838_v55 = vsel %vm3788_vm3, %v3781_v34, 0.0  ;;  %v3863_v6 = vld [vmem:[%s7024_s4] sm:$0x1] }
 0x215   : > { %v3836_v11 = vsel %vm3788_vm3, %v3780_v31, 0.0  ;;  %v3750_v52 = vadd.f32 %v5429_v61, %v6829_v5  ;;  %v5348_v12 = vpop.f32.mrb[28].mxu0 }
 0x216   : > { %v3837_v62 = vadd.f32 %v3836_v11, %v3835_v8  ;;  %v5430_v0 = vadd.f32 %v5348_v12, %v6878_v38  ;;  %v3666_v13 = vpop.f32.mrb[29].mxu0  ;;  %v3783_v14 = vmax.f32 %v3751_v7, 0.0 }
 0x217   : > { %v3782_v15 = vmax.f32 %v3750_v52, 0.0  ;;  %v5431_v17 = vadd.f32 %v3666_v13, %v6881_v43 }
 0x218   : > { %v3839_v53 = vadd.f32 %v3838_v55, %v3837_v62  ;;  %v3753_v20 = vadd.f32 %v5430_v0, %v6829_v5  ;;  %v3842_v38 = vsel %vm3788_vm3, %v3783_v14, 0.0 }
 0x219   : > { %v3840_v18 = vsel %vm3788_vm3, %v3782_v15, 0.0  ;;  %v3752_v63 = vadd.f32 %v5431_v17, %v6829_v5  ;;  %v5351_v23 = vpop.f32.mrb[30].mxu0 }
 0x21a   : > { %v3841_v51 = vadd.f32 %v3840_v18, %v3839_v53  ;;  %v5432_v45 = vadd.f32 %v5351_v23, %v6888_v30  ;;  %v3676_v54 = vpop.f32.mrb[31].mxu0  ;;  %v3785_v41 = vmax.f32 %v3753_v20, 0.0 }
 0x21b   : > { %v3784_v37 = vmax.f32 %v3752_v63, 0.0  ;;  %v5433_v1 = vadd.f32 %v3676_v54, %v6891_v60 }
 0x21c   : > { %v3843_v10 = vadd.f32 %v3842_v38, %v3841_v51  ;;  %v3755_v43 = vadd.f32 %v5432_v45, %v6829_v5  ;;  %v3846_v56 = vsel %vm3788_vm3, %v3785_v41, 0.0 }
 0x21d   : > { %v3844_v32 = vsel %vm3788_vm3, %v3784_v37, 0.0  ;;  %v3754_v28 = vadd.f32 %v5433_v1, %v6829_v5  ;;  %v3938_v5 = vld [vmem:[%s7025_s5] sm:$0xff] }
 0x21e   : > { %v3845_v24 = vadd.f32 %v3844_v32, %v3843_v10  ;;  %v3787_v19 = vmax.f32 %v3755_v43, 0.0  ;;  %v5389_v39 = vpack.c.bf16 %v3939_v35, %v3938_v5 }
 0x21f   : > { %v3786_v2 = vmax.f32 %v3754_v28, 0.0 }
 0x220   : > { %v3847_v30 = vadd.f32 %v3846_v56, %v3845_v24  ;;  %v3850_v26 = vsel %vm3788_vm3, %v3787_v19, 0.0 }
 0x221   : > { %v3848_v21 = vsel %vm3788_vm3, %v3786_v2, 0.0 }
 0x222   : > { %v3849_v22 = vadd.f32 %v3848_v21, %v3847_v30 }
 0x224   : > { %v3851_v57 = vadd.f32 %v3850_v26, %v3849_v22 }
 0x226   : > { %v3852_v60 = vrot.slane %v3851_v57, 4 }
 0x228   : > { %v3853_v3 = vadd.f32 %v3852_v60, %v3851_v57 }
 0x22a   : > { %v3854_v25 = vrot.slane %v3853_v3, 2 }
 0x22c   : > { %v3855_v27 = vadd.f32 %v3854_v25, %v3853_v3 }
 0x22e   : > { %v3856_v33 = vrot.slane %v3855_v27, 1 }
 0x230   : > { %v3857_v36 = vadd.f32 %v3856_v33, %v3855_v27 }
 0x232   : > { %v3858_v49 = vmul.f32 0.00390625, %v3857_v36 }
 0x234   : > { %5361 = vmatmul.mubr.msk.f32.vlgmr.msra.gmra.mrb[32].mxu1 %vm3788_vm3, %v3858_v49 }
 0x235   : > { %5390 = vmatpush3.bf16.msra.mxu1 %v5389_v39  ;;  %5379 = vmatprep.mubr.msk.f32.mxu1 %vm5766_vm2, %v5767_v40  ;;  %v3944_v40 = vld [vmem:[%s7025_s5 + $0x30] sm:$0xff] }
 0x236   : > { %5391 = vmatprep.subr.bf16.mxu1 %v5765_v29  ;;  %v5398_v4 = vpack.c.bf16 %v3945_v59, %v3944_v40 }
 0x239   : > { %5393 = vmatpush3.bf16.msra.mxu1 %v5392_v44 }
 0x23a   : > { %5394 = vmatprep.subr.bf16.mxu1 %v5765_v29 }
 0x23d   : > { %5396 = vmatpush3.bf16.msra.mxu1 %v5395_v47 }
 0x23e   : > { %5397 = vmatprep.subr.bf16.mxu1 %v5765_v29  ;;  %v3946_v29 = vld [vmem:[%s7026_s6] sm:$0x1] }
 0x241   : > { %5399 = vmatpush3.bf16.msra.mxu1 %v5398_v4 }
 0x307   : > { %v3933_v48 = vpop.f32.mrb[32].mxu1 }
 0x308   : > { %v3934_v9 = vadd.f32 %v3933_v48, %v3863_v6  ;;  %v5362_v16 = vpop.f32.mrb[33].mxu1 }
 0x30a   : > { %v3937_v34 = vmax.f32 %v3934_v9, 0.0 }
 0x30c   : > { %5380 = vmatmul.mubr.msk.f32.vlgmr.msra.gmra.mrb[34].mxu1 %vm3947_vm4, %v3937_v34 }
 0x3df   : > { %v4017_v31 = vpop.f32.mrb[34].mxu1 }
 0x3e0   : > { %v4018_v61 = vadd.f32 %v4017_v31, %v3946_v29  ;;  %v5381_v8 = vpop.f32.mrb[35].mxu1 }
 0x3e2   : > { %4022 = vst.msk [vmem:[%s270_s13] sm:$0x1] %vm4021_vm5, %v4018_v61 }
 0x3e3   : > { %5714 = shalt.err (!%p5711_p3)
}
 0x3e4   : > { %s5715_s21 = scalar_lea.hbm %s6978_s16, 16  ;;  %s5719_s29 = scalar_lea.hbm %s7027_s7, 32 }
 0x3e5   : > { %p5716_p4 = scmp.ne.s32.totalorder %s6978_s16, %s5715_s21  ;;  %p5720_p9 = scmp.lt.u32.totalorder %s6978_s16, %s7027_s7 }
 0x3e6   : > { %p5721_p10 = scmp.lt.u32.totalorder %s5719_s29, %s5715_s21  ;;  %p5723_p12 = scmp.lt.u32.totalorder %s5715_s21, %s6978_s16 }
 0x3e7   : > { %p5717_p7 = pnand %p5716_p4, %p5847_p5 }
 0x3e8   : > { %p5722_p11 = por %p5721_p10, %p5720_p9 }
 0x3e9   : > { %p5718_p8 = pneg %p5717_p7 }
 0x3ea   : > { %p5724_p13 = por %p5723_p12, %p5722_p11 }
 0x3ec   : > { %p5725_p0 = pnand %p5724_p13, %p5718_p8 }
 0x3ee   : > { %5728 = shalt.err (!%p5725_p0)
}
 0x3ef   : > { %5659 = dma.vmem_to_hbm [thread:$0]  (%p5847_p5), %s6980_s14, 16, %s6978_s16, %s4024_s17  }
 0x3f0 PF: > { %p5665_p1 = scmp.ge.s32.totalorder %s5763_s27, 2  ;;  %s4048_s8 = sand.u32 1, %s5751_s24  }
 0x3f1   : > { %s4049_s15 = scalar_lea.sflag [#allocation3], %s4048_s8 }
 0x3f2   : > { %p5662_p2 = pnand %p5665_p1, %p5851_p6 }
 0x3f4   : > { %5746 = dma.done.wait (!%p5662_p2), %s4049_s15, 16  }
 0x3f5   : > { %5748 = vsyncadd (!%p5662_p2), %s4049_s15, 4294967280  ;;  %p17_p3 = scmp.ge.s32.totalorder %s5834_s30, 4   ;;  %s7132_s24 = smov %s5755_s25 }
 0x3f6   : > { %s7133_s25 = smov %s5759_s26  ;;  %s7134_s26 = smov %s5845_s10 }
 0x3f7   : > { %s7135_s27 = smov %s5834_s30  ;;  %19 = sbr.rel (!%p17_p3) target bundleno = 3 (0x3), region = 85 }
 0x3fe   :  { %4053 = vsyncpa [#allocation3], 1 }
 0x3ff   :  { %4055 = vsyncpa [#allocation3 + $0x1], 1 }

</bundles_post_ra>
